<compile_context>
chip_gen: v7x
topology: tpu7x:2x2x1
jax: 0.10.0
libtpu: 0.0.40
codegen_flags: <defaults>
</compile_context>

<pallas_src>
import functools

import jax
import jax.numpy as jnp
from jax.experimental import pallas as pl
from jax.experimental.pallas import tpu as pltpu


def _round_up(x, m):
    return ((x + m - 1) // m) * m


def _vmem_budget_bytes():
    """Scoped-VMEM budget derived from the chip, with headroom.

    ~48 MiB on v7x (64 MiB physical per TensorCore), ~96 MiB on v5e/v6e
    (128 MiB physical).  Conservative 48 MiB fallback if the query fails.
    """
    try:
        phys = int(pltpu.get_tpu_info().vmem_capacity_bytes)
    except Exception:
        phys = 64 * 1024 * 1024
    return int(min((phys * 3) // 4, 96 * 1024 * 1024))


# ---------------------------------------------------------------------------
# Kernels
# ---------------------------------------------------------------------------

def _embeddings_kernel(idx_ref, table_ref, gamma_ref, beta_ref, o_ref, *,
                       true_h, eps, precision):
    """Fused (token + position/type) gather + LayerNorm on one row tile.

    idx_ref:    (tm, 2) int32  -- [:,0] token row, [:,1] position row
                                  (already offset by vocab_size wrapper-side).
    table_ref:  (rows_p, h_pad) fused embedding table, zero-padded rows/cols.
    gamma/beta: (1, h_pad) f32  LayerNorm params, zero-padded columns.
    o_ref:      (tm, h_pad) output (padded columns are written as zeros).
    """
    tm = idx_ref.shape[0]
    rows_p, h_pad = table_ref.shape

    ids = idx_ref[:, 0:1]      # (tm, 1)
    pids = idx_ref[:, 1:2]     # (tm, 1)

    # Fused gather of (token row + position row) as a one-hot MXU matmul:
    # each output row selects exactly two rows of the fused table.
    cols = jax.lax.broadcasted_iota(jnp.int32, (tm, rows_p), 1)
    sel = jnp.logical_or(cols == ids, cols == pids).astype(table_ref.dtype)
    if precision is None:
        x = jax.lax.dot_general(sel, table_ref[...],
                                dimension_numbers=(((1,), (0,)), ((), ())),
                                preferred_element_type=jnp.float32)
    else:
        x = jax.lax.dot_general(sel, table_ref[...],
                                dimension_numbers=(((1,), (0,)), ((), ())),
                                preferred_element_type=jnp.float32,
                                precision=precision)

    # LayerNorm over the true hidden width.  Padded table columns are exactly
    # zero, so the row sums only need a closed-form variance correction.
    inv_h = 1.0 / float(true_h)
    mean = jnp.sum(x, axis=-1, keepdims=True) * inv_h
    d = x - mean
    ss = jnp.sum(d * d, axis=-1, keepdims=True)
    var = (ss - float(h_pad - true_h) * mean * mean) * inv_h
    y = d * jax.lax.rsqrt(var + eps)
    y = y * gamma_ref[...].astype(jnp.float32) + beta_ref[...].astype(jnp.float32)

    # Dropout: identity in eval mode.
    o_ref[...] = y.astype(o_ref.dtype)


def _layernorm_kernel(x_ref, gamma_ref, beta_ref, o_ref, *, eps):
    """Plain LayerNorm tile kernel (large-vocab fallback path)."""
    x = x_ref[...].astype(jnp.float32)
    mean = jnp.mean(x, axis=-1, keepdims=True)
    d = x - mean
    var = jnp.mean(d * d, axis=-1, keepdims=True)
    y = d * jax.lax.rsqrt(var + eps)
    y = y * gamma_ref[...].astype(jnp.float32) + beta_ref[...].astype(jnp.float32)
    o_ref[...] = y.astype(o_ref.dtype)


# ---------------------------------------------------------------------------
# pallas_call wrappers
# ---------------------------------------------------------------------------

def _run_table_kernel(idx, table, gamma, beta, *, true_h, eps, tm, out_dtype,
                      vmem_limit, fancy):
    n = idx.shape[0]
    rows_p, h_pad = table.shape
    grid = (pl.cdiv(n, tm),)

    if fancy:
        # Constant-index blocks need no double buffer; the one-hot gather is
        # numerically exact with f32 table + HIGHEST (multi-pass) matmul, or a
        # single native MXU pass with a bf16 table.
        const_kw = dict(pipeline_mode=pl.Buffered(1))
        precision = (jax.lax.Precision.HIGHEST
                     if table.dtype == jnp.float32 else jax.lax.Precision.DEFAULT)
    else:
        const_kw = {}
        precision = None

    kernel = functools.partial(_embeddings_kernel, true_h=true_h, eps=eps,
                               precision=precision)
    return pl.pallas_call(
        kernel,
        out_shape=jax.ShapeDtypeStruct((n, h_pad), out_dtype),
        grid_spec=pltpu.PrefetchScalarGridSpec(
            num_scalar_prefetch=0,
            grid=grid,
            in_specs=[
                pl.BlockSpec((tm, 2), lambda i: (i, 0)),                      # fused ids
                pl.BlockSpec((rows_p, h_pad), lambda i: (0, 0), **const_kw),  # table
                pl.BlockSpec((1, h_pad), lambda i: (0, 0), **const_kw),       # gamma
                pl.BlockSpec((1, h_pad), lambda i: (0, 0), **const_kw),       # beta
            ],
            out_specs=pl.BlockSpec((tm, h_pad), lambda i: (i, 0)),
        ),
        compiler_params=pltpu.CompilerParams(
            dimension_semantics=("parallel",),
            vmem_limit_bytes=int(vmem_limit),
        ),
    )(idx, table, gamma, beta)


def _embeddings_table_call(idx, table, gamma, beta, **kw):
    # Prefer the optimized configuration (single-buffered constants + explicit
    # matmul precision); fall back to the plain configuration if this Pallas
    # build rejects either knob, so the kernel always runs.
    try:
        return _run_table_kernel(idx, table, gamma, beta, fancy=True, **kw)
    except Exception:
        return _run_table_kernel(idx, table, gamma, beta, fancy=False, **kw)


def layernorm_pallas(x, gamma, beta, *, eps, tm, out_dtype, vmem_limit):
    n, h = x.shape
    per_row = 2 * h * 4 + 2 * h * jnp.dtype(out_dtype).itemsize + 4 * h * 4
    tm_fit = max(8, ((vmem_limit - (4 << 20)) // per_row) // 8 * 8)
    tm = max(8, min(int(tm), int(tm_fit),
                    max(8, _round_up((n + 1) // 2, 8)), _round_up(n, 8)))
    return pl.pallas_call(
        functools.partial(_layernorm_kernel, eps=eps),
        out_shape=jax.ShapeDtypeStruct((n, h), out_dtype),
        grid_spec=pltpu.PrefetchScalarGridSpec(
            num_scalar_prefetch=0,
            grid=(pl.cdiv(n, tm),),
            in_specs=[
                pl.BlockSpec((tm, h), lambda i: (i, 0)),
                pl.BlockSpec((1, h), lambda i: (0, 0)),
                pl.BlockSpec((1, h), lambda i: (0, 0)),
            ],
            out_specs=pl.BlockSpec((tm, h), lambda i: (i, 0)),
        ),
        compiler_params=pltpu.CompilerParams(
            dimension_semantics=("parallel",),
            vmem_limit_bytes=int(vmem_limit),
        ),
    )(x, gamma, beta)


# ---------------------------------------------------------------------------
# Module-level wrapper
# ---------------------------------------------------------------------------

def create_position_ids_from_input_ids(input_ids, padding_idx,
                                       past_key_values_length=0):
    mask = (input_ids != padding_idx).astype(jnp.int32)
    incremental = (jnp.cumsum(mask, axis=1) + past_key_values_length) * mask
    return incremental + padding_idx


def build_fused_table(params, *, table_dtype=jnp.float32):
    """One-time parameter precompute (hoisted out of the per-call path).

    Folds the LinearTranspose into a per-token embedding table, folds the
    constant token-type-0 row into the position table (the module's default
    token_type_ids buffer is all zeros), and zero-pads rows to a multiple of
    256 and the hidden axis to a multiple of 128 (clean MXU tiles, lane-dense
    stores).
    """
    tc = params["target_coordinates"].astype(jnp.float32)            # (V, P)
    w = params["primitive_weight"].astype(jnp.float32)               # (H, P)
    pos = params["position_embeddings"].astype(jnp.float32)          # (Pmax, H)
    tok0 = params["token_type_embeddings"][0][None, :].astype(jnp.float32)

    vocab_size = tc.shape[0]
    hidden = w.shape[0]
    emb = jnp.dot(tc, w.T, preferred_element_type=jnp.float32,
                  precision=jax.lax.Precision.HIGHEST)                # (V, H)
    table = jnp.concatenate([emb, pos + tok0], axis=0)                # (V+Pmax, H)

    rows = table.shape[0]
    rows_p = _round_up(rows, 256)
    h_pad = _round_up(hidden, 128)
    table = jnp.pad(table, ((0, rows_p - rows), (0, h_pad - hidden)))
    gamma = jnp.pad(params["ln_gamma"].reshape(1, hidden).astype(jnp.float32),
                    ((0, 0), (0, h_pad - hidden)))
    beta = jnp.pad(params["ln_beta"].reshape(1, hidden).astype(jnp.float32),
                   ((0, 0), (0, h_pad - hidden)))
    return {
        "table": table.astype(table_dtype),
        "gamma": gamma,
        "beta": beta,
        "vocab_size": int(vocab_size),
        "hidden": int(hidden),
        "h_pad": int(h_pad),
        "rows_p": int(rows_p),
    }


def _choose_tm(n, rows_p, h_pad, table_itemsize, out_itemsize, tm_req,
               vmem_budget):
    """Largest row tile fitting the VMEM budget (None -> use fallback path)."""
    slack = 2 * 1024 * 1024
    # Pessimistic: assume the table might still be double-buffered.
    static_bytes = 2 * rows_p * h_pad * table_itemsize + 4 * h_pad * 4
    avail = vmem_budget - slack - static_bytes
    if avail <= 0:
        return None
    per_row = (
        2 * 2 * 4                      # (tm, 2) int32 ids, double-buffered
        + 2 * h_pad * out_itemsize     # (tm, h_pad) output, double-buffered
        + 2 * rows_p * 4               # iota + one-hot intermediates
        + 6 * h_pad * 4                # f32 x/d/y temporaries + headroom
    )
    tm_fit = (avail // per_row) // 8 * 8
    if tm_fit < 8:
        return None
    tm = min(int(tm_req), int(tm_fit))
    # Keep >= 2 grid steps so both v7x TensorCores get work under the
    # "parallel" grid axis (near-free on single-core v5e/v6e).
    tm = min(tm, max(8, _round_up((n + 1) // 2, 8)))
    return max(8, min(tm, _round_up(n, 8)))


def primitive_embeddings_forward(input_ids, params, *, eps=1e-12, tm=1024,
                                 out_dtype=jnp.float32,
                                 table_dtype=jnp.float32, fused=None,
                                 position_ids=None, past_key_values_length=0,
                                 force_gather_fallback=False):
    """Module forward (input_ids path, token_type_ids == zeros, eval mode)."""
    b, s = input_ids.shape
    if fused is None:
        fused = build_fused_table(params, table_dtype=table_dtype)
    if position_ids is None:
        position_ids = create_position_ids_from_input_ids(
            input_ids, params["pad_token_id"], past_key_values_length)

    n = b * s
    vocab_size = fused["vocab_size"]
    hidden = fused["hidden"]
    ids = input_ids.reshape(n).astype(jnp.int32)
    pids = position_ids.reshape(n).astype(jnp.int32) + vocab_size

    # NOTE: token ids must lie in [0, vocab_size) and position ids in
    # [0, max_position_embeddings); out-of-range indices gather a zero row
    # instead of raising like torch.nn.Embedding would.

    vmem_budget = _vmem_budget_bytes()
    tm_eff = None if force_gather_fallback else _choose_tm(
        n, fused["rows_p"], fused["h_pad"],
        jnp.dtype(fused["table"].dtype).itemsize,
        jnp.dtype(out_dtype).itemsize, tm, vmem_budget)

    if tm_eff is None:
        # Large-vocab fallback: the fused table does not fit VMEM, so gather
        # rows HBM-side with XLA and only run LayerNorm in Pallas.
        # TODO(synk): fused scalar-prefetch / manual-DMA row-gather kernel.
        x = (jnp.take(fused["table"], ids, axis=0).astype(jnp.float32)
             + jnp.take(fused["table"], pids, axis=0).astype(jnp.float32))
        x = x[:, :hidden]
        out = layernorm_pallas(x, fused["gamma"][:, :hidden],
                               fused["beta"][:, :hidden], eps=eps, tm=tm,
                               out_dtype=out_dtype, vmem_limit=vmem_budget)
        return out.reshape(b, s, hidden)

    idx = jnp.stack([ids, pids], axis=1)                              # (n, 2)
    out = _embeddings_table_call(idx, fused["table"], fused["gamma"],
                                 fused["beta"], true_h=hidden, eps=eps,
                                 tm=tm_eff, out_dtype=out_dtype,
                                 vmem_limit=vmem_budget)
    return out[:, :hidden].reshape(b, s, hidden)


def _reference_forward(input_ids, params, eps=1e-12):
    """Pure-JAX reference mirroring the PyTorch module (eval mode)."""
    pad = params["pad_token_id"]
    position_ids = create_position_ids_from_input_ids(input_ids, pad)
    coords = params["target_coordinates"][input_ids]
    inputs_embeds = jnp.einsum("bsp,hp->bsh", coords,
                               params["primitive_weight"],
                               precision=jax.lax.Precision.HIGHEST)
    tok_emb = params["token_type_embeddings"][jnp.zeros_like(input_ids)]
    pos_emb = params["position_embeddings"][position_ids]
    x = inputs_embeds + tok_emb + pos_emb
    mean = jnp.mean(x, axis=-1, keepdims=True)
    var = jnp.mean(jnp.square(x - mean), axis=-1, keepdims=True)
    xn = (x - mean) * jax.lax.rsqrt(var + eps)
    return xn * params["ln_gamma"] + params["ln_beta"]


if __name__ == "__main__":
    # small config consistent with the module
    vocab_size = 16
    num_primitive = 4
    hidden_size = 32
    max_position_embeddings = 64
    type_vocab_size = 2
    pad_token_id = 1
    layer_norm_eps = 1e-12
    B, S = 2, 8

    key = jax.random.PRNGKey(0)
    k1, k2, k3, k4, k5 = jax.random.split(key, 5)

    # deterministic parameter init (nn.Embedding padding rows zeroed,
    # LayerNorm gamma=1 / beta=0, LinearTranspose weight random)
    target_coordinates = jax.random.normal(
        k1, (vocab_size, num_primitive), dtype=jnp.float32)
    target_coordinates = target_coordinates.at[pad_token_id].set(0.0)

    primitive_weight = jax.random.normal(
        k2, (hidden_size, num_primitive), dtype=jnp.float32) * 0.1

    position_embeddings = jax.random.normal(
        k3, (max_position_embeddings, hidden_size), dtype=jnp.float32) * 0.02
    position_embeddings = position_embeddings.at[pad_token_id].set(0.0)

    token_type_embeddings = jax.random.normal(
        k4, (type_vocab_size, hidden_size), dtype=jnp.float32) * 0.02

    params = {
        "pad_token_id": pad_token_id,
        "target_coordinates": target_coordinates,
        "primitive_weight": primitive_weight,
        "position_embeddings": position_embeddings,
        "token_type_embeddings": token_type_embeddings,
        "ln_gamma": jnp.ones((hidden_size,), dtype=jnp.float32),
        "ln_beta": jnp.zeros((hidden_size,), dtype=jnp.float32),
    }

    # example input ids with a couple of padding positions
    input_ids = jax.random.randint(k5, (B, S), 0, vocab_size, dtype=jnp.int32)
    input_ids = input_ids.at[0, -2:].set(pad_token_id)
    input_ids = input_ids.at[1, -1:].set(pad_token_id)

    # One-time, parameter-only precompute of the fused/padded table.
    fused = build_fused_table(params)

    ref = _reference_forward(input_ids, params, eps=layer_norm_eps)

    # Main path: VMEM-resident fused table, one-hot MXU gather + LayerNorm.
    out = primitive_embeddings_forward(input_ids, params, eps=layer_norm_eps,
                                       fused=fused)
    out = jax.block_until_ready(out)
    assert out.shape == (B, S, hidden_size)
    assert jnp.allclose(out, ref, atol=1e-5, rtol=1e-5)

    # Also exercise the large-vocab fallback (HBM gather + LayerNorm kernel).
    out_fb = primitive_embeddings_forward(input_ids, params,
                                          eps=layer_norm_eps, fused=fused,
                                          force_gather_fallback=True)
    out_fb = jax.block_until_ready(out_fb)
    assert jnp.allclose(out_fb, ref, atol=1e-5, rtol=1e-5)

    print("KERNEL_OK")
</pallas_src>

<mosaic_0001>
module attributes {stable_mosaic.version = 11 : i64} {
  func.func @_embeddings_kernel(%arg0: i32, %arg1: memref<8x2xi32, #tpu.memory_space<vmem>>, %arg2: memref<256x128xf32, #tpu.memory_space<vmem>>, %arg3: memref<1x128xf32, #tpu.memory_space<vmem>>, %arg4: memref<1x128xf32, #tpu.memory_space<vmem>>, %arg5: memref<8x128xf32, #tpu.memory_space<vmem>>) attributes {dimension_semantics = [#tpu.dimension_semantics<parallel>], iteration_bounds = array<i64: 2>, scalar_prefetch = 0 : i64, scratch_operands = 0 : i64, tpu.core_type = #tpu.core_type<tc>, window_params = [{transform_indices = @transform_0, window_bounds = array<i64: 8, 2>}, {pipeline_mode = #tpu.pipeline_mode<synchronous>, transform_indices = @transform_1, window_bounds = array<i64: 256, 128>}, {pipeline_mode = #tpu.pipeline_mode<synchronous>, transform_indices = @transform_2, window_bounds = array<i64: 1, 128>}, {pipeline_mode = #tpu.pipeline_mode<synchronous>, transform_indices = @transform_3, window_bounds = array<i64: 1, 128>}, {transform_indices = @transform_4, window_bounds = array<i64: 8, 128>}]} {
    %c0 = arith.constant 0 : index
    %c0_0 = arith.constant 0 : index
    %0 = vector.load %arg1[%c0, %c0_0] : memref<8x2xi32, #tpu.memory_space<vmem>>, vector<8x1xi32>
    %c0_1 = arith.constant 0 : index
    %c1 = arith.constant 1 : index
    %1 = vector.load %arg1[%c0_1, %c1] : memref<8x2xi32, #tpu.memory_space<vmem>>, vector<8x1xi32>
    %2 = tpu.iota {dimensions = array<i32: 1>} : vector<8x256xi32>
    %3 = vector.broadcast %0 : vector<8x1xi32> to vector<8x256xi32>
    %4 = arith.cmpi eq, %2, %3 : vector<8x256xi32>
    %5 = vector.broadcast %1 : vector<8x1xi32> to vector<8x256xi32>
    %6 = arith.cmpi eq, %2, %5 : vector<8x256xi32>
    %7 = arith.ori %4, %6 : vector<8x256xi1>
    %8 = arith.extui %7 : vector<8x256xi1> to vector<8x256xi32>
    %9 = arith.sitofp %8 : vector<8x256xi32> to vector<8x256xf32>
    %c0_2 = arith.constant 0 : index
    %c0_3 = arith.constant 0 : index
    %10 = vector.load %arg2[%c0_2, %c0_3] : memref<256x128xf32, #tpu.memory_space<vmem>>, vector<256x128xf32>
    %cst = arith.constant dense<0.000000e+00> : vector<8x128xf32>
    %11 = tpu.matmul %9, %10, %cst {dimension_numbers = #tpu.dot_dimension_numbers<[1], [0], [0], [1], [0, 0, 1, 1], [], []>, precision = #tpu.contract_precision<fp32>} : vector<8x256xf32>, vector<256x128xf32>, vector<8x128xf32> -> vector<8x128xf32>
    %cst_4 = arith.constant dense<0.000000e+00> : vector<8xf32>
    %12 = vector.multi_reduction <add>, %11, %cst_4 [1] : vector<8x128xf32> to vector<8xf32>
    %13 = vector.shape_cast %12 : vector<8xf32> to vector<8x1xf32>
    %cst_5 = arith.constant 3.125000e-02 : f32
    %14 = vector.broadcast %cst_5 : f32 to vector<8x1xf32>
    %15 = arith.mulf %13, %14 : vector<8x1xf32>
    %16 = vector.broadcast %15 : vector<8x1xf32> to vector<8x128xf32>
    %17 = arith.subf %11, %16 : vector<8x128xf32>
    %18 = arith.mulf %17, %17 : vector<8x128xf32>
    %cst_6 = arith.constant dense<0.000000e+00> : vector<8xf32>
    %19 = vector.multi_reduction <add>, %18, %cst_6 [1] : vector<8x128xf32> to vector<8xf32>
    %20 = vector.shape_cast %19 : vector<8xf32> to vector<8x1xf32>
    %cst_7 = arith.constant 9.600000e+01 : f32
    %21 = vector.broadcast %cst_7 : f32 to vector<8x1xf32>
    %22 = arith.mulf %21, %15 : vector<8x1xf32>
    %23 = arith.mulf %22, %15 : vector<8x1xf32>
    %24 = arith.subf %20, %23 : vector<8x1xf32>
    %cst_8 = arith.constant 3.125000e-02 : f32
    %25 = vector.broadcast %cst_8 : f32 to vector<8x1xf32>
    %26 = arith.mulf %24, %25 : vector<8x1xf32>
    %cst_9 = arith.constant 9.99999996E-13 : f32
    %27 = vector.broadcast %cst_9 : f32 to vector<8x1xf32>
    %28 = arith.addf %26, %27 : vector<8x1xf32>
    %29 = math.rsqrt %28 : vector<8x1xf32>
    %30 = vector.broadcast %29 : vector<8x1xf32> to vector<8x128xf32>
    %31 = arith.mulf %17, %30 : vector<8x128xf32>
    %c0_10 = arith.constant 0 : index
    %c0_11 = arith.constant 0 : index
    %32 = vector.load %arg3[%c0_10, %c0_11] : memref<1x128xf32, #tpu.memory_space<vmem>>, vector<1x128xf32>
    %33 = vector.broadcast %32 : vector<1x128xf32> to vector<8x128xf32>
    %34 = arith.mulf %31, %33 : vector<8x128xf32>
    %c0_12 = arith.constant 0 : index
    %c0_13 = arith.constant 0 : index
    %35 = vector.load %arg4[%c0_12, %c0_13] : memref<1x128xf32, #tpu.memory_space<vmem>>, vector<1x128xf32>
    %36 = vector.broadcast %35 : vector<1x128xf32> to vector<8x128xf32>
    %37 = arith.addf %34, %36 : vector<8x128xf32>
    %c0_14 = arith.constant 0 : index
    %c0_15 = arith.constant 0 : index
    %38 = vector.load %arg5[%c0_14, %c0_15] : memref<8x128xf32, #tpu.memory_space<vmem>>, vector<8x128xf32>
    tpu.vector_store %arg5[%c0_14, %c0_15], %37 {strides = array<i32>} : memref<8x128xf32, #tpu.memory_space<vmem>>, vector<8x128xf32>,
    return
  }
  func.func @transform_0(%arg0: i32) -> (i32, i32) {
    %c0_i32 = arith.constant 0 : i32
    %c0_i32_0 = arith.constant 0 : i32
    return %arg0, %c0_i32 : i32, i32
  }
  func.func @transform_1(%arg0: i32) -> (i32, i32) {
    %c0_i32 = arith.constant 0 : i32
    %c0_i32_0 = arith.constant 0 : i32
    %c0_i32_1 = arith.constant 0 : i32
    return %c0_i32, %c0_i32_0 : i32, i32
  }
  func.func @transform_2(%arg0: i32) -> (i32, i32) {
    %c0_i32 = arith.constant 0 : i32
    %c0_i32_0 = arith.constant 0 : i32
    %c0_i32_1 = arith.constant 0 : i32
    return %c0_i32, %c0_i32_0 : i32, i32
  }
  func.func @transform_3(%arg0: i32) -> (i32, i32) {
    %c0_i32 = arith.constant 0 : i32
    %c0_i32_0 = arith.constant 0 : i32
    %c0_i32_1 = arith.constant 0 : i32
    return %c0_i32, %c0_i32_0 : i32, i32
  }
  func.func @transform_4(%arg0: i32) -> (i32, i32) {
    %c0_i32 = arith.constant 0 : i32
    %c0_i32_0 = arith.constant 0 : i32
    return %arg0, %c0_i32 : i32, i32
  }
}

module attributes {stable_mosaic.version = 11 : i64} {
  func.func @_embeddings_kernel(%arg0: i32, %arg1: memref<8x2xi32, #tpu.memory_space<vmem>>, %arg2: memref<256x128xf32, #tpu.memory_space<vmem>>, %arg3: memref<1x128xf32, #tpu.memory_space<vmem>>, %arg4: memref<1x128xf32, #tpu.memory_space<vmem>>, %arg5: memref<8x128xf32, #tpu.memory_space<vmem>>) attributes {dimension_semantics = [#tpu.dimension_semantics<parallel>], iteration_bounds = array<i64: 2>, scalar_prefetch = 0 : i64, scratch_operands = 0 : i64, tpu.core_type = #tpu.core_type<tc>, window_params = [{transform_indices = @transform_0, window_bounds = array<i64: 8, 2>}, {pipeline_mode = #tpu.pipeline_mode<synchronous>, transform_indices = @transform_1, window_bounds = array<i64: 256, 128>}, {pipeline_mode = #tpu.pipeline_mode<synchronous>, transform_indices = @transform_2, window_bounds = array<i64: 1, 128>}, {pipeline_mode = #tpu.pipeline_mode<synchronous>, transform_indices = @transform_3, window_bounds = array<i64: 1, 128>}, {transform_indices = @transform_4, window_bounds = array<i64: 8, 128>}]} {
    %c0 = arith.constant 0 : index
    %c0_0 = arith.constant 0 : index
    %0 = vector.load %arg1[%c0, %c0_0] : memref<8x2xi32, #tpu.memory_space<vmem>>, vector<8x1xi32>
    %c0_1 = arith.constant 0 : index
    %c1 = arith.constant 1 : index
    %1 = vector.load %arg1[%c0_1, %c1] : memref<8x2xi32, #tpu.memory_space<vmem>>, vector<8x1xi32>
    %2 = tpu.iota {dimensions = array<i32: 1>} : vector<8x256xi32>
    %3 = vector.broadcast %0 : vector<8x1xi32> to vector<8x256xi32>
    %4 = arith.cmpi eq, %2, %3 : vector<8x256xi32>
    %5 = vector.broadcast %1 : vector<8x1xi32> to vector<8x256xi32>
    %6 = arith.cmpi eq, %2, %5 : vector<8x256xi32>
    %7 = arith.ori %4, %6 : vector<8x256xi1>
    %8 = arith.extui %7 : vector<8x256xi1> to vector<8x256xi32>
    %9 = arith.sitofp %8 : vector<8x256xi32> to vector<8x256xf32>
    %c0_2 = arith.constant 0 : index
    %c0_3 = arith.constant 0 : index
    %10 = vector.load %arg2[%c0_2, %c0_3] : memref<256x128xf32, #tpu.memory_space<vmem>>, vector<256x128xf32>
    %cst = arith.constant dense<0.000000e+00> : vector<8x128xf32>
    %11 = tpu.matmul %9, %10, %cst {dimension_numbers = #tpu.dot_dimension_numbers<[1], [0], [0], [1], [0, 0, 1, 1], [], []>} : vector<8x256xf32>, vector<256x128xf32>, vector<8x128xf32> -> vector<8x128xf32>
    %cst_4 = arith.constant dense<0.000000e+00> : vector<8xf32>
    %12 = vector.multi_reduction <add>, %11, %cst_4 [1] : vector<8x128xf32> to vector<8xf32>
    %13 = vector.shape_cast %12 : vector<8xf32> to vector<8x1xf32>
    %cst_5 = arith.constant 3.125000e-02 : f32
    %14 = vector.broadcast %cst_5 : f32 to vector<8x1xf32>
    %15 = arith.mulf %13, %14 : vector<8x1xf32>
    %16 = vector.broadcast %15 : vector<8x1xf32> to vector<8x128xf32>
    %17 = arith.subf %11, %16 : vector<8x128xf32>
    %18 = arith.mulf %17, %17 : vector<8x128xf32>
    %cst_6 = arith.constant dense<0.000000e+00> : vector<8xf32>
    %19 = vector.multi_reduction <add>, %18, %cst_6 [1] : vector<8x128xf32> to vector<8xf32>
    %20 = vector.shape_cast %19 : vector<8xf32> to vector<8x1xf32>
    %cst_7 = arith.constant 9.600000e+01 : f32
    %21 = vector.broadcast %cst_7 : f32 to vector<8x1xf32>
    %22 = arith.mulf %21, %15 : vector<8x1xf32>
    %23 = arith.mulf %22, %15 : vector<8x1xf32>
    %24 = arith.subf %20, %23 : vector<8x1xf32>
    %cst_8 = arith.constant 3.125000e-02 : f32
    %25 = vector.broadcast %cst_8 : f32 to vector<8x1xf32>
    %26 = arith.mulf %24, %25 : vector<8x1xf32>
    %cst_9 = arith.constant 9.99999996E-13 : f32
    %27 = vector.broadcast %cst_9 : f32 to vector<8x1xf32>
    %28 = arith.addf %26, %27 : vector<8x1xf32>
    %29 = math.rsqrt %28 : vector<8x1xf32>
    %30 = vector.broadcast %29 : vector<8x1xf32> to vector<8x128xf32>
    %31 = arith.mulf %17, %30 : vector<8x128xf32>
    %c0_10 = arith.constant 0 : index
    %c0_11 = arith.constant 0 : index
    %32 = vector.load %arg3[%c0_10, %c0_11] : memref<1x128xf32, #tpu.memory_space<vmem>>, vector<1x128xf32>
    %33 = vector.broadcast %32 : vector<1x128xf32> to vector<8x128xf32>
    %34 = arith.mulf %31, %33 : vector<8x128xf32>
    %c0_12 = arith.constant 0 : index
    %c0_13 = arith.constant 0 : index
    %35 = vector.load %arg4[%c0_12, %c0_13] : memref<1x128xf32, #tpu.memory_space<vmem>>, vector<1x128xf32>
    %36 = vector.broadcast %35 : vector<1x128xf32> to vector<8x128xf32>
    %37 = arith.addf %34, %36 : vector<8x128xf32>
    %c0_14 = arith.constant 0 : index
    %c0_15 = arith.constant 0 : index
    %38 = vector.load %arg5[%c0_14, %c0_15] : memref<8x128xf32, #tpu.memory_space<vmem>>, vector<8x128xf32>
    tpu.vector_store %arg5[%c0_14, %c0_15], %37 {strides = array<i32>} : memref<8x128xf32, #tpu.memory_space<vmem>>, vector<8x128xf32>,
    return
  }
  func.func @transform_0(%arg0: i32) -> (i32, i32) {
    %c0_i32 = arith.constant 0 : i32
    %c0_i32_0 = arith.constant 0 : i32
    return %arg0, %c0_i32 : i32, i32
  }
  func.func @transform_1(%arg0: i32) -> (i32, i32) {
    %c0_i32 = arith.constant 0 : i32
    %c0_i32_0 = arith.constant 0 : i32
    %c0_i32_1 = arith.constant 0 : i32
    return %c0_i32, %c0_i32_0 : i32, i32
  }
  func.func @transform_2(%arg0: i32) -> (i32, i32) {
    %c0_i32 = arith.constant 0 : i32
    %c0_i32_0 = arith.constant 0 : i32
    %c0_i32_1 = arith.constant 0 : i32
    return %c0_i32, %c0_i32_0 : i32, i32
  }
  func.func @transform_3(%arg0: i32) -> (i32, i32) {
    %c0_i32 = arith.constant 0 : i32
    %c0_i32_0 = arith.constant 0 : i32
    %c0_i32_1 = arith.constant 0 : i32
    return %c0_i32, %c0_i32_0 : i32, i32
  }
  func.func @transform_4(%arg0: i32) -> (i32, i32) {
    %c0_i32 = arith.constant 0 : i32
    %c0_i32_0 = arith.constant 0 : i32
    return %arg0, %c0_i32 : i32, i32
  }
}

</mosaic_0001>

<bundles_post_ra>
// kernel: tpu_custom_call.1
= control target key start
LH: loop header
LB: loop body
LE: loop exit
PB: predicated region body
PF: predicated region fallthrough
CT: control target
= control target key end

     0   :  { %9 = vsyncpa [#allocation3], 0  ;;  %s2667_s0 = inlined_call_operand.vmem [shape: s32[16,2], index: 0, kind: input, shape index: {}]   ;;  %s2668_s1 = inlined_call_operand.hbm [shape: f32[256,128], index: 1, kind: input, shape index: {}]   ;;  %s2669_s2 = inlined_call_operand.vmem [shape: f32[1,128], index: 2, kind: input, shape index: {}]   ;;  %s2670_s3 = inlined_call_operand.vmem [shape: f32[1,128], index: 3, kind: input, shape index: {}]   ;;  %s2671_s4 = inlined_call_operand.hbm [shape: f32[16,128], index: 4, kind: output, shape index: {}]  }
   0x1   :  { %10 = vsyncpa [#allocation4], 0 }
   0x2   :  { %12 = vsyncpa [#allocation4 + $0x1], 0  ;;  %s1851_s15 = smov 0   ;;  %s1853_s16 = smov 0  }
   0x3   :  { %s1855_s17 = smov 0   ;;  %s1857_s18 = smov 0  }
   0x4 LB: > { %s1872_s19 = sadd.s32 4294967295, %s1816_s18   ;;  %s1238_s20 = sadd.s32 4294967294, %s1816_s18   ;;  %s1816_s18 = sphi %s1857_s18, %s2805_s18   ;;  %s1812_s17 = sphi %s1855_s17, %s2804_s17   ;;  %s1808_s16 = sphi %s1853_s16, %s2803_s16   ;;  %s1804_s15 = sphi %s1851_s15, %s2802_s15  }
   0x5   : > { %s1876_s21 = sadd.s32 1, %s1816_s18   ;;  %s114_s22 = sadd.s32 1, %s1812_s17 }
   0x6   : > { %s111_s23 = ssub.s32 %s1816_s18, %s1876_s21  ;;  %p124_p0 = scmp.ne.s32.totalorder %s1812_s17, %s1808_s16 }
   0x7   : > { %p112_p1 = scmp.eq.s32.totalorder %s111_s23, 0  ;;  %p125_p2 = scmp.eq.s32.totalorder %s1872_s19, 1 }
   0x8   : > { %p130_p3 = scmp.ne.s32.totalorder %s1808_s16, %s1804_s15  ;;  %p131_p4 = scmp.eq.s32.totalorder %s1238_s20, 1 }
   0x9   : > { %s1887_s24 = scalar_select %p112_p1, %s1812_s17, %s114_s22  }
   0xa   : > { %p1889_p5 = por %p125_p2, %p124_p0  ;;  %p1893_p6 = por %p131_p4, %p130_p3 }
   0xb   : > { %p1239_p7 = scmp.ge.s32.totalorder %s1816_s18, 1  ;;  %p138_p8 = scmp.lt.s32.totalorder %s1816_s18, 3 }
   0xc   : > { %s2720_s25 = scalar_select %p1889_p5, 1, 0 }
   0xd   : > { %s2721_s26 = scalar_select %p1893_p6, 1, 0 }
   0xe   : > { %p2672_p9 = scmp.eq.s32.totalorder %s1872_s19, 0  ;;  %p1900_p10 = pnand %p1239_p7, %p138_p8 }
   0xf   : > { %s1818_s28 = smov [#allocation2]   ;;  %s1722_s7 = scalar_lea.hbm %s2668_s1, 4096 }
  0x10   : > { %s2722_s27 = scalar_select %p1900_p10, 1, 0 }
  0x11   : > { %s150_s29 = sshll.u32 %s1818_s28, 4  ;;  %p1668_p11 = pneg %p1900_p10  ;;  %s151_s29 = int_to_ptr.vmem [resolvable:$true] %s150_s29 }
  0x12   : > { %p1723_p13 = scmp.ne.s32.totalorder %s2668_s1, %s1722_s7  ;;  %p1729_p3 = scmp.lt.u32.totalorder %s1722_s7, %s2668_s1 }
  0x13   : > { %p1908_p12 = pnand %p2672_p9, %p1668_p11 }
  0x15   : > { %p1724_p0 = pneg %p1908_p12 }
  0x17   : > { %p1725_p1 = pnand %p1724_p0, %p1723_p13 }
  0x19   : > { %p1726_p2 = pneg %p1725_p1 }
  0x1b   : > { %p1731_p4 = pnand %p1729_p3, %p1726_p2 }
  0x1d   : > { %1734 = shalt.err (!%p1731_p4)
}
  0x1e   : > { %s1735_s12 = scalar_lea.vmem %s151_s29, 4096  ;;  %p1743_p9 = scmp.lt.s32.totalorder %s151_s29, %s151_s29 }
  0x1f   : > { %p1736_p7 = scmp.ne.s32.totalorder %s151_s29, %s1735_s12  ;;  %p1744_p6 = scmp.lt.s32.totalorder %s1735_s12, %s1735_s12 }
  0x21   : > { %p1738_p8 = pnand %p1736_p7, %p1724_p0  ;;  %p1745_p5 = por %p1744_p6, %p1743_p9 }
  0x23   : > { %p1739_p11 = pneg %p1738_p8 }
  0x25   : > { %p1746_p10 = pnand %p1745_p5, %p1739_p11 }
  0x27   : > { %1749 = shalt.err (!%p1746_p10)
}
  0x28   : > { %s1819_s13 = smov 128   ;;  %s1820_s14 = smov 8  }
  0x29   : > { %1671 = dma.hbm_to_vmem [thread:$0]  (!%p1908_p12), %s2668_s1, 4096, %s151_s29, [#allocation3], %s1819_s13, %s1819_s13, %s1820_s14  }
  0x2a   : > { %p2724_p13 = scmp.ne.s32.totalorder %s2722_s27, 0 }
  0x2c   : > { %179 = sbr.rel (%p2724_p13) target bundleno = 817 (0x331), region = 36 }
  0x33   : > { %p2725_p1 = scmp.eq.s32.totalorder %s1872_s19, 0 }
  0x35   : > { %1795 = dma.done.wait (%p2725_p1), [#allocation3], 4096   ;;  %p2726_p0 = pmov %p2725_p1 }
  0x36   : > { %p204_p5 = scmp.lt.s32.totalorder %s1872_s19, 1  ;;  %v1821_v0 = vmov 0   ;;  %v244_v2 = vld [vmem:[#allocation2 + $0x80] sm:$0xff]  ;;  %v245_v3 = vld [vmem:[#allocation2 + $0x88] sm:$0xff]  ;;  %v1943_v8 = vld [vmem:[#allocation2 + $0x90] sm:$0xff]  ;;  %v1822_v23 = vmov 1  }
  0x37   : > { %1797 = vsyncadd (%p2726_p0), [#allocation3], 4294963200  ;;  %1718 = vset.pattern.permute.xlu0 %v1821_v0  ;;  %v309_v4 = vand.u32 4294901760, %v244_v2  ;;  %v312_v5 = vand.u32 4294901760, %v245_v3  ;;  %v1939_v6 = vld [vmem:[#allocation2] sm:$0xff]  ;;  %v1941_v7 = vld [vmem:[#allocation2 + $0x8] sm:$0xff] }
  0x38   : > { %s205_s23 = scalar_select %p204_p5, %s1872_s19, 1  ;;  %v261_v9 = vand.u32 4294901760, %v1939_v6  ;;  %v264_v10 = vand.u32 4294901760, %v1941_v7  ;;  %v1947_v11 = vld [vmem:[#allocation2 + $0x98] sm:$0xff]  ;;  %v315_v12 = vand.u32 4294901760, %v1943_v8  ;;  %v1950_v13 = vld [vmem:[#allocation2 + $0x10] sm:$0xff] }
  0x39   : > { %v1952_v14 = vld [vmem:[#allocation2 + $0x18] sm:$0xff]  ;;  %v1954_v15 = vsub.f32 %v244_v2, %v309_v4  ;;  %v1956_v16 = vsub.f32 %v245_v3, %v312_v5  ;;  %v318_v17 = vand.u32 4294901760, %v1947_v11  ;;  %v267_v18 = vand.u32 4294901760, %v1950_v13  ;;  %v2014_v40 = vld [vmem:[#allocation2 + $0xa0] sm:$0xff]  ;;  %v2022_v45 = vld [vmem:[#allocation2 + $0xa8] sm:$0xff]  ;;  %s201_s27 = sand.u32 1, %s1808_s16  }
  0x3a   : > { %s1245_s28 = sshll.u32 %s205_s23, 3  ;;  %v1963_v19 = vsub.f32 %v1939_v6, %v261_v9  ;;  %v1968_v20 = vsub.f32 %v1941_v7, %v264_v10  ;;  %v1973_v21 = vsub.f32 %v1943_v8, %v315_v12  ;;  %v270_v22 = vand.u32 4294901760, %v1952_v14  ;;  %v2027_v50 = vld [vmem:[#allocation2 + $0x20] sm:$0xff]  ;;  %v2029_v51 = vld [vmem:[#allocation2 + $0x28] sm:$0xff]  ;;  %v2032_v56 = vld [vmem:[#allocation2 + $0xb0] sm:$0xff]  ;;  %s1244_s6 = sshll.u32 %s201_s27, 3 }
  0x3b   : > { %s207_s29 = scalar_lea.vmem %s2667_s0, %s1245_s28  ;;  %v2695_v24 = vand.u32 4294901760, %v1954_v15  ;;  %v2693_v25 = vand.u32 4294901760, %v1956_v16  ;;  %v1981_v26 = vsub.f32 %v1947_v11, %v318_v17  ;;  %v1986_v27 = vsub.f32 %v1950_v13, %v267_v18  ;;  %v2037_v61 = vld [vmem:[#allocation2 + $0xb8] sm:$0xff]  ;;  %v2046_v2 = vld [vmem:[#allocation2 + $0x30] sm:$0xff]  ;;  %s1257_s11 = sshll.u32 %s1872_s19, 7 }
  0x3c   : > { %v208_v1 = vld [vmem:[%s207_s29] sm:$0xff]  ;;  %v2691_v28 = vand.u32 4294901760, %v1963_v19  ;;  %v2689_v29 = vand.u32 4294901760, %v1968_v20  ;;  %v2688_v30 = vand.u32 4294901760, %v1973_v21  ;;  %v1994_v31 = vsub.f32 %v1952_v14, %v270_v22  ;;  %v2073_v7 = vld [vmem:[#allocation2 + $0x38] sm:$0xff]  ;;  %s203_s12 = scalar_lea.vmem [#allocation5], %s1244_s6  ;;  %s2625_s22 = scalar_lea.hbm %s2671_s4, %s1257_s11 }
  0x3d   : > { %213 = vperm.xlu0 %1718, %v208_v1   ;;  %v488_v32 = vsub.f32 %v1954_v15, %v2695_v24  ;;  %v495_v33 = vsub.f32 %v1956_v16, %v2693_v25  ;;  %v2687_v34 = vand.u32 4294901760, %v1981_v26  ;;  %v2684_v35 = vand.u32 4294901760, %v1986_v27  ;;  %v2262_v24 = vld [vmem:[#allocation2 + $0x60] sm:$0xff]  ;;  %s1167_s13 = sshll.u32 %s203_s12, 4  ;;  %s1154_s23 = scalar_lea.sflag [#allocation4], %s201_s27  ;;  %s2627_s13 = int_to_ptr.vmem [resolvable:$true] %s1167_s13 }
  0x3e   : > { %v376_v36 = vsub.f32 %v1963_v19, %v2691_v28  ;;  %v383_v37 = vsub.f32 %v1968_v20, %v2689_v29  ;;  %v502_v38 = vsub.f32 %v1973_v21, %v2688_v30  ;;  %v2680_v39 = vand.u32 4294901760, %v1994_v31  ;;  %v2236_v30 = vld [vmem:[#allocation2 + $0xe0] sm:$0xff]  ;;  %s1750_s28 = scalar_lea.vmem %s2627_s13, 128  ;;  %p2800_p9 = scmp.ne.s32.totalorder %s2720_s25, 0 }
  0x3f   : > { %v489_v41 = vand.u32 4294901760, %v488_v32  ;;  %v496_v42 = vand.u32 4294901760, %v495_v33  ;;  %v509_v43 = vsub.f32 %v1981_v26, %v2687_v34  ;;  %v390_v44 = vsub.f32 %v1986_v27, %v2684_v35  ;;  %p1751_p6 = scmp.ne.s32.totalorder %s2627_s13, %s1750_s28  ;;  %s1825_s19 = smov [#allocation5]  }
  0x40   : > { %v377_v46 = vand.u32 4294901760, %v376_v36  ;;  %v384_v47 = vand.u32 4294901760, %v383_v37  ;;  %v503_v48 = vand.u32 4294901760, %v502_v38  ;;  %v397_v49 = vsub.f32 %v1994_v31, %v2680_v39  ;;  %s1754_s30 = sshll.u32 %s1825_s19, 4  ;;  %s1755_s30 = int_to_ptr.vmem [resolvable:$false] %s1754_s30 }
  0x41   : > { %1719 = vset.pattern.permute.xlu0 %v1822_v23  ;;  %v1502_v52 = vpack.c.bf16 %v496_v42, %v489_v41  ;;  %v510_v53 = vand.u32 4294901760, %v509_v43  ;;  %v391_v54 = vand.u32 4294901760, %v390_v44  ;;  %v321_v55 = vand.u32 4294901760, %v2014_v40  ;;  %p1752_p10 = pnand %p1751_p6, %p2800_p9  ;;  %s1756_s5 = scalar_lea.vmem %s1755_s30, 256 }
  0x42   : > { %218 = vperm.xlu0 %1719, %v208_v1   ;;  %v1504_v57 = vpack.c.bf16 %v384_v47, %v377_v46  ;;  %v398_v58 = vand.u32 4294901760, %v397_v49  ;;  %v324_v59 = vand.u32 4294901760, %v2022_v45  ;;  %v2035_v60 = vpack.c.bf16 %v312_v5, %v309_v4  ;;  %p1757_p2 = scmp.lt.s32.totalorder %s2627_s13, %s1755_s30  ;;  %p1758_p3 = scmp.lt.s32.totalorder %s1756_s5, %s1750_s28 }
  0x43   : > { %1503 = vmatprep.subr.bf16.mxu1 %v1502_v52  ;;  %v1506_v62 = vpack.c.bf16 %v510_v53, %v503_v48  ;;  %v2042_v63 = vsub.f32 %v2014_v40, %v321_v55  ;;  %v273_v0 = vand.u32 4294901760, %v2027_v50  ;;  %v276_v1 = vand.u32 4294901760, %v2029_v51  ;;  %p1753_p12 = pneg %p1752_p10 }
  0x44   : > { %1505 = vmatpush3.bf16.msra.mxu1 %v1504_v57  ;;  %v1508_v3 = vpack.c.bf16 %v398_v58, %v391_v54  ;;  %v2051_v4 = vsub.f32 %v2022_v45, %v324_v59  ;;  %1471 = vmatprep.subr.bf16.mxu0 %v2035_v60  ;;  %v2058_v5 = vpack.c.bf16 %v264_v10, %v261_v9  ;;  %v327_v23 = vand.u32 4294901760, %v2032_v56  ;;  %v2126_v58 = vld [vmem:[#allocation2 + $0xc0] sm:$0xff]  ;;  %p1759_p4 = por %p1758_p3, %p1757_p2 }
  0x45   : > { %1507 = vmatprep.subr.bf16.mxu1 %v1506_v62  ;;  %v2679_v32 = vand.u32 4294901760, %v2042_v63  ;;  %v2065_v33 = vsub.f32 %v2027_v50, %v273_v0  ;;  %v2070_v36 = vsub.f32 %v2029_v51, %v276_v1  ;;  %v330_v6 = vand.u32 4294901760, %v2037_v61  ;;  %v2128_v62 = vld [vmem:[#allocation2 + $0xc8] sm:$0xff]  ;;  %v2198_v50 = vld [vmem:[#allocation2 + $0x58] sm:$0xff] }
  0x46   : > { %v2678_v9 = vand.u32 4294901760, %v2051_v4  ;;  %1473 = vmatpush3.bf16.msra.mxu0 %v2058_v5  ;;  %v2080_v10 = vsub.f32 %v2032_v56, %v327_v23  ;;  %v2086_v37 = vpack.c.bf16 %v318_v17, %v315_v12  ;;  %v279_v38 = vand.u32 4294901760, %v2046_v2  ;;  %p1760_p7 = pnand %p1759_p4, %p1753_p12 }
  0x47   : > { %v516_v41 = vsub.f32 %v2042_v63, %v2679_v32  ;;  %v2677_v42 = vand.u32 4294901760, %v2065_v33  ;;  %v2676_v43 = vand.u32 4294901760, %v2070_v36  ;;  %v2097_v44 = vsub.f32 %v2037_v61, %v330_v6 }
  0x48   : > { %1509 = vmatpush3.bf16.msra.mxu1 %v1508_v3  ;;  %v523_v8 = vsub.f32 %v2051_v4, %v2678_v9  ;;  %v2675_v11 = vand.u32 4294901760, %v2080_v10  ;;  %1475 = vmatprep.subr.bf16.mxu0 %v2086_v37  ;;  %v282_v12 = vand.u32 4294901760, %v2073_v7  ;;  %v2108_v17 = vsub.f32 %v2046_v2, %v279_v38 }
  0x49   : > { %v517_v46 = vand.u32 4294901760, %v516_v41  ;;  %v404_v47 = vsub.f32 %v2065_v33, %v2677_v42  ;;  %v411_v48 = vsub.f32 %v2070_v36, %v2676_v43  ;;  %v2681_v49 = vand.u32 4294901760, %v2097_v44  ;;  %v2139_v43 = vld [vmem:[#allocation2 + $0x40] sm:$0xff] }
  0x4a   : > { %v524_v52 = vand.u32 4294901760, %v523_v8  ;;  %v530_v53 = vsub.f32 %v2080_v10, %v2675_v11  ;;  %v2683_v54 = vand.u32 4294901760, %v2108_v17  ;;  %v2124_v57 = vsub.f32 %v2073_v7, %v282_v12 }
  0x4b   : > { %v405_v3 = vand.u32 4294901760, %v404_v47  ;;  %v412_v41 = vand.u32 4294901760, %v411_v48  ;;  %v537_v8 = vsub.f32 %v2097_v44, %v2681_v49  ;;  %v2137_v11 = vpack.c.bf16 %v270_v22, %v267_v18  ;;  %v2145_v48 = vld [vmem:[#allocation2 + $0x48] sm:$0xff]  ;;  %v2150_v18 = vld [vmem:[#allocation2 + $0xd0] sm:$0xff] }
  0x4c   : > { %v1510_v42 = vpack.c.bf16 %v524_v52, %v517_v46  ;;  %v531_v9 = vand.u32 4294901760, %v530_v53  ;;  %v418_v32 = vsub.f32 %v2108_v17, %v2683_v54  ;;  %v2682_v47 = vand.u32 4294901760, %v2124_v57 }
  0x4d   : > { %v1512_v39 = vpack.c.bf16 %v412_v41, %v405_v3  ;;  %v538_v49 = vand.u32 4294901760, %v537_v8  ;;  %1477 = vmatpush3.bf16.msra.mxu0 %v2137_v11  ;;  %v333_v13 = vand.u32 4294901760, %v2126_v58  ;;  %v336_v14 = vand.u32 4294901760, %v2128_v62  ;;  %v2162_v3 = vld [vmem:[#allocation2 + $0xd8] sm:$0xff] }
  0x4e   : > { %1511 = vmatprep.subr.bf16.mxu1 %v1510_v42  ;;  %v419_v22 = vand.u32 4294901760, %v418_v32  ;;  %v425_v46 = vsub.f32 %v2124_v57, %v2682_v47  ;;  %v2159_v52 = vpack.c.bf16 %v324_v59, %v321_v55  ;;  %v285_v53 = vand.u32 4294901760, %v2139_v43  ;;  %v2196_v47 = vld [vmem:[#allocation2 + $0x50] sm:$0xff] }
  0x4f   : > { %1513 = vmatpush3.bf16.msra.mxu1 %v1512_v39  ;;  %v1514_v41 = vpack.c.bf16 %v538_v49, %v531_v9  ;;  %v2167_v32 = vsub.f32 %v2126_v58, %v333_v13  ;;  %v2172_v42 = vsub.f32 %v2128_v62, %v336_v14  ;;  %v288_v40 = vand.u32 4294901760, %v2145_v48 }
  0x50   : > { %v426_v45 = vand.u32 4294901760, %v425_v46  ;;  %1479 = vmatprep.subr.bf16.mxu0 %v2159_v52  ;;  %v2179_v39 = vsub.f32 %v2139_v43, %v285_v53  ;;  %v2185_v55 = vpack.c.bf16 %v276_v1, %v273_v0  ;;  %v339_v59 = vand.u32 4294901760, %v2150_v18 }
  0x51   : > { %1515 = vmatprep.subr.bf16.mxu1 %v1514_v41  ;;  %v2686_v9 = vand.u32 4294901760, %v2167_v32  ;;  %v2685_v49 = vand.u32 4294901760, %v2172_v42  ;;  %v2193_v8 = vsub.f32 %v2145_v48, %v288_v40  ;;  %v2698_v46 = vand.u32 4294901760, %v2162_v3  ;;  %v242_v48 = vld [vmem:[#allocation2 + $0x70] sm:$0xff] }
  0x52   : > { %v1516_v51 = vpack.c.bf16 %v426_v45, %v419_v22  ;;  %v2690_v0 = vand.u32 4294901760, %v2179_v39  ;;  %1481 = vmatpush3.bf16.msra.mxu0 %v2185_v55  ;;  %v2205_v1 = vsub.f32 %v2150_v18, %v339_v59  ;;  %v2211_v41 = vpack.c.bf16 %v330_v6, %v327_v23 }
  0x53   : > { %v544_v54 = vsub.f32 %v2167_v32, %v2686_v9  ;;  %v551_v22 = vsub.f32 %v2172_v42, %v2685_v49  ;;  %v2692_v45 = vand.u32 4294901760, %v2193_v8  ;;  %v2223_v35 = vsub.f32 %v2162_v3, %v2698_v46 }
  0x54   : > { %1517 = vmatpush3.bf16.msra.mxu1 %v1516_v51  ;;  %v432_v56 = vsub.f32 %v2179_v39, %v2690_v0  ;;  %v2694_v61 = vand.u32 4294901760, %v2205_v1  ;;  %1483 = vmatprep.subr.bf16.mxu0 %v2211_v41  ;;  %v2696_v23 = vand.u32 4294901760, %v2196_v47  ;;  %v2697_v6 = vand.u32 4294901760, %v2198_v50 }
  0x55   : > { %v545_v49 = vand.u32 4294901760, %v544_v54  ;;  %v552_v9 = vand.u32 4294901760, %v551_v22  ;;  %v439_v34 = vsub.f32 %v2193_v8, %v2692_v45  ;;  %v2699_v51 = vand.u32 4294901760, %v2223_v35  ;;  %v2251_v22 = vld [vmem:[#allocation2 + $0xe8] sm:$0xff] }
  0x56   : > { %v433_v29 = vand.u32 4294901760, %v432_v56  ;;  %v558_v0 = vsub.f32 %v2205_v1, %v2694_v61  ;;  %v2244_v28 = vsub.f32 %v2196_v47, %v2696_v23  ;;  %v2249_v54 = vsub.f32 %v2198_v50, %v2697_v6 }
  0x57   : > { %v1518_v45 = vpack.c.bf16 %v552_v9, %v545_v49  ;;  %v440_v25 = vand.u32 4294901760, %v439_v34  ;;  %v565_v56 = vsub.f32 %v2223_v35, %v2699_v51  ;;  %v2260_v61 = vpack.c.bf16 %v282_v12, %v279_v38  ;;  %v2267_v34 = vld [vmem:[#allocation2 + $0x68] sm:$0xff] }
  0x58   : > { %v559_v23 = vand.u32 4294901760, %v558_v0  ;;  %v2701_v6 = vand.u32 4294901760, %v2244_v28  ;;  %v2700_v46 = vand.u32 4294901760, %v2249_v54  ;;  %v345_v9 = vand.u32 4294901760, %v2236_v30  ;;  %v258_v0 = vld [vmem:[#allocation2 + $0xf0] sm:$0xff] }
  0x59   : > { %2727 = vst [vmem:[#allocation8_spill] sm:$0xff] %v2260_v61  ;;  %1519 = vmatprep.subr.bf16.mxu1 %v1518_v45  ;;  %v1520_v49 = vpack.c.bf16 %v440_v25, %v433_v29  ;;  %v566_v51 = vand.u32 4294901760, %v565_v56  ;;  %1485 = vmatpush3.bf16.msra.mxu0 %v2260_v61  ;;  %v348_v2 = vand.u32 4294901760, %v2251_v22  ;;  %v2275_v7 = vpack.c.bf16 %v336_v14, %v333_v13  ;;  %v259_v45 = vld [vmem:[#allocation2 + $0xf8] sm:$0xff] }
  0x5a   : > { %v446_v38 = vsub.f32 %v2244_v28, %v2701_v6  ;;  %v453_v12 = vsub.f32 %v2249_v54, %v2700_v46  ;;  %v2284_v25 = vsub.f32 %v2236_v30, %v345_v9  ;;  %v297_v29 = vand.u32 4294901760, %v2262_v24 }
  0x5b   : > { %2728 = vst [vmem:[#allocation9_spill] sm:$0xff] %v2275_v7  ;;  %1521 = vmatpush3.bf16.msra.mxu1 %v1520_v49  ;;  %v1522_v58 = vpack.c.bf16 %v566_v51, %v559_v23  ;;  %v2288_v62 = vsub.f32 %v2251_v22, %v348_v2  ;;  %1487 = vmatprep.subr.bf16.mxu0 %v2275_v7  ;;  %v300_v13 = vand.u32 4294901760, %v2267_v34  ;;  %v351_v43 = vand.u32 4294901760, %v258_v0 }
  0x5c   : > { %v2296_v14 = vpack.c.bf16 %v288_v40, %v285_v53  ;;  %v447_v30 = vand.u32 4294901760, %v446_v38  ;;  %v454_v56 = vand.u32 4294901760, %v453_v12  ;;  %v2705_v46 = vand.u32 4294901760, %v2284_v25  ;;  %v243_v53 = vld [vmem:[#allocation2 + $0x78] sm:$0xff] }
  0x5d   : > { %v2300_v49 = vsub.f32 %v2262_v24, %v297_v29  ;;  %1523 = vmatprep.subr.bf16.mxu1 %v1522_v58  ;;  %v2704_v23 = vand.u32 4294901760, %v2288_v62  ;;  %v2304_v51 = vsub.f32 %v2267_v34, %v300_v13  ;;  %v354_v22 = vand.u32 4294901760, %v259_v45 }
  0x5e   : > { %2729 = vst [vmem:[#allocation10_spill] sm:$0xff] %v2296_v14  ;;  %1489 = vmatpush3.bf16.msra.mxu0 %v2296_v14  ;;  %v1524_v40 = vpack.c.bf16 %v454_v56, %v447_v30  ;;  %v572_v38 = vsub.f32 %v2284_v25, %v2705_v46  ;;  %v2730_v12 = vand.u32 4294901760, %v2162_v3  ;;  %v2321_v14 = vsub.f32 %v258_v0, %v351_v43 }
  0x5f   : > { %v2706_v24 = vand.u32 4294901760, %v2300_v49  ;;  %v579_v34 = vsub.f32 %v2288_v62, %v2704_v23  ;;  %v2713_v6 = vand.u32 4294901760, %v2304_v51  ;;  %v2323_v30 = vsub.f32 %v259_v45, %v354_v22 }
  0x60   : > { %v2315_v58 = vpack.c.bf16 %v2730_v12, %v339_v59  ;;  %1525 = vmatpush3.bf16.msra.mxu1 %v1524_v40  ;;  %v573_v56 = vand.u32 4294901760, %v572_v38  ;;  %v303_v3 = vand.u32 4294901760, %v242_v48  ;;  %v306_v59 = vand.u32 4294901760, %v243_v53 }
  0x61   : > { %v460_v18 = vsub.f32 %v2300_v49, %v2706_v24  ;;  %v580_v12 = vand.u32 4294901760, %v579_v34  ;;  %v467_v23 = vsub.f32 %v2304_v51, %v2713_v6  ;;  %v2715_v0 = vand.u32 4294901760, %v2321_v14 }
  0x62   : > { %2731 = vst [vmem:[#allocation11_spill] sm:$0xff] %v2315_v58  ;;  %1491 = vmatprep.subr.bf16.mxu0 %v2315_v58  ;;  %v2714_v45 = vand.u32 4294901760, %v2323_v30  ;;  %v2334_v40 = vsub.f32 %v242_v48, %v303_v3  ;;  %v2336_v38 = vsub.f32 %v243_v53, %v306_v59  ;;  %v2732_v24 = vand.u32 4294901760, %v2196_v47 }
  0x63   : > { %v461_v46 = vand.u32 4294901760, %v460_v18  ;;  %v2733_v58 = vand.u32 4294901760, %v2198_v50  ;;  %v1526_v34 = vpack.c.bf16 %v580_v12, %v573_v56  ;;  %v468_v61 = vand.u32 4294901760, %v467_v23 }
  0x64   : > { %v586_v6 = vsub.f32 %v2321_v14, %v2715_v0  ;;  %v593_v18 = vsub.f32 %v2323_v30, %v2714_v45  ;;  %v473_v48 = vand.u32 4294901760, %v2334_v40  ;;  %v480_v53 = vand.u32 4294901760, %v2336_v38 }
  0x65   : > { %v2342_v7 = vpack.c.bf16 %v2733_v58, %v2732_v24  ;;  %v2353_v47 = vpack.c.bf16 %v348_v2, %v345_v9  ;;  %1527 = vmatprep.subr.bf16.mxu1 %v1526_v34  ;;  %v1528_v50 = vpack.c.bf16 %v468_v61, %v461_v46  ;;  %v2355_v58 = vpack.c.bf16 %v300_v13, %v297_v29 }
  0x66   : > { %v587_v24 = vand.u32 4294901760, %v586_v6  ;;  %v594_v23 = vand.u32 4294901760, %v593_v18  ;;  %v474_v56 = vsub.f32 %v2334_v40, %v473_v48  ;;  %v481_v12 = vsub.f32 %v2336_v38, %v480_v53 }
  0x67   : > { %2734 = vst [vmem:[#allocation12_spill] sm:$0xff] %v2342_v7  ;;  %1493 = vmatpush3.bf16.msra.mxu0 %v2342_v7  ;;  %v2360_v45 = vpack.c.bf16 %v354_v22, %v351_v43  ;;  %v2362_v0 = vpack.c.bf16 %v306_v59, %v303_v3  ;;  %1529 = vmatpush3.bf16.msra.mxu1 %v1528_v50  ;;  %v2746_v18 = vand.u32 4294901760, %v2070_v36 }
  0x68   : > { %1495 = vmatprep.subr.bf16.mxu0 %v2353_v47  ;;  %v1530_v7 = vpack.c.bf16 %v594_v23, %v587_v24  ;;  %v1534_v9 = vpack.c.bf16 %v1956_v16, %v1954_v15  ;;  %v475_v6 = vand.u32 4294901760, %v474_v56  ;;  %v482_v2 = vand.u32 4294901760, %v481_v12 }
  0x69   : > { %v2737_v24 = vand.u32 4294901760, %v1963_v19  ;;  %v2740_v56 = vand.u32 4294901760, %v1981_v26 }
  0x6a   : > { %1531 = vmatprep.subr.bf16.mxu1 %v1530_v7  ;;  %v1532_v59 = vpack.c.bf16 %v482_v2, %v475_v6  ;;  %v2735_v6 = vand.u32 4294901760, %v1954_v15  ;;  %v2736_v2 = vand.u32 4294901760, %v1956_v16  ;;  %v2738_v7 = vand.u32 4294901760, %v1968_v20 }
  0x6b   : > { %1497 = vmatpush3.bf16.msra.mxu0 %v2355_v58  ;;  %v2741_v15 = vand.u32 4294901760, %v1986_v27  ;;  %v2742_v16 = vand.u32 4294901760, %v1994_v31 }
  0x6c   : > { %1499 = vmatprep.subr.bf16.mxu0 %v2360_v45  ;;  %1533 = vmatpush3.bf16.msra.mxu1 %v1532_v59  ;;  %v2403_v50 = vpack.c.bf16 %v2736_v2, %v2735_v6  ;;  %v2409_v23 = vpack.c.bf16 %v2738_v7, %v2737_v24  ;;  %v2739_v59 = vand.u32 4294901760, %v1973_v21  ;;  %v2743_v2 = vand.u32 4294901760, %v2042_v63 }
  0x6d   : > { %1567 = vmatprep.subr.bf16.mxu1 %v2035_v60  ;;  %v2422_v6 = vpack.c.bf16 %v2742_v16, %v2741_v15  ;;  %v2744_v7 = vand.u32 4294901760, %v2051_v4  ;;  %v2749_v15 = vand.u32 4294901760, %v2108_v17  ;;  %v2750_v16 = vand.u32 4294901760, %v2124_v57 }
  0x6e   : > { %v2416_v12 = vpack.c.bf16 %v2740_v56, %v2739_v59  ;;  %v2747_v56 = vand.u32 4294901760, %v2080_v10  ;;  %v2748_v59 = vand.u32 4294901760, %v2097_v44 }
  0x6f   : > { %1501 = vmatpush3.bf16.msra.mxu0 %v2362_v0  ;;  %v2428_v24 = vpack.c.bf16 %v2744_v7, %v2743_v2  ;;  %v2446_v22 = vpack.c.bf16 %v2750_v16, %v2749_v15  ;;  %v2752_v2 = vand.u32 4294901760, %v2167_v32  ;;  %v2753_v7 = vand.u32 4294901760, %v2172_v42 }
  0x70   : > { %1535 = vmatprep.subr.bf16.mxu0 %v1534_v9  ;;  %v2745_v9 = vand.u32 4294901760, %v2065_v33  ;;  %v2440_v3 = vpack.c.bf16 %v2748_v59, %v2747_v56  ;;  %v2758_v56 = vand.u32 4294901760, %v2205_v1  ;;  %v2759_v59 = vand.u32 4294901760, %v2223_v35 }
  0x71   : > { %2751 = vst [vmem:[#allocation13_spill] sm:$0xff] %v2446_v22  ;;  %v2452_v43 = vpack.c.bf16 %v2753_v7, %v2752_v2  ;;  %v2761_v15 = vand.u32 4294901760, %v2244_v28  ;;  %v2762_v16 = vand.u32 4294901760, %v2249_v54  ;;  %v2764_v2 = vand.u32 4294901760, %v2284_v25 }
  0x72   : > { %v2434_v34 = vpack.c.bf16 %v2746_v18, %v2745_v9  ;;  %v2755_v18 = vand.u32 4294901760, %v2179_v39  ;;  %v2756_v9 = vand.u32 4294901760, %v2193_v8  ;;  %v2464_v29 = vpack.c.bf16 %v2759_v59, %v2758_v56 }
  0x73   : > { %2754 = vst [vmem:[#allocation14_spill] sm:$0xff] %v2452_v43  ;;  %v2470_v61 = vpack.c.bf16 %v2762_v16, %v2761_v15  ;;  %v2765_v7 = vand.u32 4294901760, %v2288_v62  ;;  %v2768_v56 = vand.u32 4294901760, %v2321_v14  ;;  %v2769_v59 = vand.u32 4294901760, %v2323_v30 }
  0x74   : > { %v2458_v13 = vpack.c.bf16 %v2756_v9, %v2755_v18  ;;  %2760 = vst [vmem:[#allocation16_spill] sm:$0xff] %v2464_v29  ;;  %v2766_v18 = vand.u32 4294901760, %v2300_v49  ;;  %v2767_v9 = vand.u32 4294901760, %v2304_v51  ;;  %v2490_v15 = vpack.c.bf16 %v480_v53, %v473_v48 }
  0x75   : > { %2763 = vst [vmem:[#allocation17_spill] sm:$0xff] %v2470_v61  ;;  %v2476_v46 = vpack.c.bf16 %v2765_v7, %v2764_v2  ;;  %v2488_v29 = vpack.c.bf16 %v2769_v59, %v2768_v56  ;;  %v209_v16 = vlaneseq  ;;  %v2718_v59 = vmov 1.0  }
  0x76   : > { %2757 = vst [vmem:[#allocation15_spill] sm:$0xff] %v2458_v13  ;;  %v2482_v13 = vpack.c.bf16 %v2767_v9, %v2766_v18  ;;  %v1823_v9 = vmov 0.0  }
  0x77   : > { %v210_v61 = vand.u32 127, %v209_v16 }
  0x79   : > { %v211_v22 = vadd.s32 128, %v210_v61 }
  0xbc   : > { %v214_v43 = vpop.permute.xlu0 %213 }
  0xbd   : > { %vm215_vm0 = vcmp.eq.s32.totalorder %v210_v61, %v214_v43  ;;  %vm216_vm3 = vcmp.eq.s32.totalorder %v211_v22, %v214_v43 }
  0xc1   : > { %v219_v2 = vpop.permute.xlu0 %218 }
  0xc2   : > { %vm220_vm1 = vcmp.eq.s32.totalorder %v210_v61, %v219_v2  ;;  %vm221_vm2 = vcmp.eq.s32.totalorder %v211_v22, %v219_v2 }
  0xc3   : > { %vm2492_vm4 = vmor %vm215_vm0, %vm220_vm1 }
  0xc4   : > { %vm2496_vm5 = vmor %vm216_vm3, %vm221_vm2  ;;  %v1246_v48 = vsel %vm2492_vm4, 1.0, %v1823_v9 }
  0xc5   : > { %v1247_v53 = vsel %vm2496_vm5, 1.0, %v1823_v9  ;;  %v363_v56 = vsub.f32 %v1246_v48, %v1246_v48  ;;  %1248 = vmatprep.mubr.msk.f32.mxu1 %vm2496_vm5, %v2718_v59 }
  0xc6   : > { %v357_v61 = vsub.f32 %v1247_v53, %v1247_v53  ;;  %1249 = vmatmul.mubr.msk.f32.vlgmr.msra.gmra.mrb[0].mxu1 %vm2492_vm4, %v2718_v59  ;;  %v2774_v53 = vpack.c.bf16 %v1968_v20, %v1963_v19  ;;  %v2776_v59 = vld [vmem:[#allocation8_spill] sm:$0xff]  ;;  %v2780_v19 = vld [vmem:[#allocation10_spill] sm:$0xff]  ;;  %v2781_v20 = vpack.c.bf16 %v2070_v36, %v2065_v33  ;;  %v2788_v33 = vpack.c.bf16 %v2223_v35, %v2205_v1 }
  0xc7   : > { %1569 = vmatpush3.bf16.msra.mxu1 %v2058_v5  ;;  %v364_v43 = vand.u32 4294901760, %v363_v56  ;;  %v2789_v36 = vpack.c.bf16 %v2249_v54, %v2244_v28  ;;  %v2792_v35 = vpack.c.bf16 %v2304_v51, %v2300_v49  ;;  %v2793_v28 = vpack.c.bf16 %v2323_v30, %v2321_v14 }
  0xc8   : > { %1571 = vmatprep.subr.bf16.mxu1 %v2086_v37  ;;  %v358_v22 = vand.u32 4294901760, %v357_v61 }
  0xc9   : > { %v365_v16 = vsub.f32 %v363_v56, %v364_v43 }
  0xca   : > { %841 = vmatprep.mubr.f32.mxu1 %v358_v22  ;;  %v359_v2 = vsub.f32 %v357_v61, %v358_v22  ;;  %v2775_v22 = vpack.c.bf16 %v1981_v26, %v1973_v21  ;;  %v2782_v21 = vld [vmem:[#allocation11_spill] sm:$0xff]  ;;  %v2783_v26 = vpack.c.bf16 %v2097_v44, %v2080_v10  ;;  %v2790_v10 = vpack.c.bf16 %v2288_v62, %v2284_v25 }
  0xcb   : > { %1573 = vmatpush3.bf16.msra.mxu1 %v2137_v11  ;;  %v366_v9 = vand.u32 4294901760, %v365_v16  ;;  %v2777_v16 = vpack.c.bf16 %v1994_v31, %v1986_v27  ;;  %v2784_v27 = vld [vmem:[#allocation12_spill] sm:$0xff]  ;;  %v2785_v31 = vpack.c.bf16 %v2124_v57, %v2108_v17  ;;  %v2791_v44 = vmov 1.0   ;;  %v2799_v57 = vld [vmem:[#allocation17_spill] sm:$0xff] }
  0xcc   : > { %1575 = vmatprep.subr.bf16.mxu1 %v2159_v52  ;;  %v360_v48 = vand.u32 4294901760, %v359_v2  ;;  %v2778_v2 = vld [vmem:[#allocation9_spill] sm:$0xff]  ;;  %v2798_v17 = vld [vmem:[#allocation16_spill] sm:$0xff] }
  0xce   : > { %361 = vmatprep.mubr.f32.mxu0 %v360_v48 }
  0xcf   : > { %1577 = vmatpush3.bf16.msra.mxu1 %v2185_v55  ;;  %367 = vmatmul.mubr.f32.vlgmr.msra.gmra.mrb[0].mxu0 %v366_v9  ;;  %v2779_v9 = vpack.c.bf16 %v2051_v4, %v2042_v63  ;;  %v2786_v63 = vpack.c.bf16 %v2172_v42, %v2167_v32  ;;  %v2787_v4 = vpack.c.bf16 %v2193_v8, %v2179_v39 }
  0xd0   : > { %1537 = vmatpush3.bf16.msra.mxu0 %v2774_v53  ;;  %734 = vmatprep.mubr.f32.mxu0 %v357_v61  ;;  %v1255_v61 = vld [vmem:[%s2670_s3] ss:$0 sm:$0xff] }
  0xd1   : > { %1579 = vmatprep.subr.bf16.mxu1 %v2211_v41  ;;  %1539 = vmatprep.subr.bf16.mxu0 %v2775_v22 }
  0xd3   : > { %1581 = vmatpush3.bf16.msra.mxu1 %v2776_v59 }
  0xd4   : > { %1541 = vmatpush3.bf16.msra.mxu0 %v2777_v16  ;;  %1583 = vmatprep.subr.bf16.mxu1 %v2778_v2 }
  0xd5   : > { %1543 = vmatprep.subr.bf16.mxu0 %v2779_v9 }
  0xd7   : > { %1585 = vmatpush3.bf16.msra.mxu1 %v2780_v19 }
  0xd8   : > { %1545 = vmatpush3.bf16.msra.mxu0 %v2781_v20  ;;  %1587 = vmatprep.subr.bf16.mxu1 %v2782_v21 }
  0xd9   : > { %1547 = vmatprep.subr.bf16.mxu0 %v2783_v26 }
  0xdb   : > { %1589 = vmatpush3.bf16.msra.mxu1 %v2784_v27 }
  0xdc   : > { %1549 = vmatpush3.bf16.msra.mxu0 %v2785_v31  ;;  %1591 = vmatprep.subr.bf16.mxu1 %v2353_v47 }
  0xdd   : > { %1551 = vmatprep.subr.bf16.mxu0 %v2786_v63 }
  0xdf   : > { %1593 = vmatpush3.bf16.msra.mxu1 %v2355_v58 }
  0xe0   : > { %1553 = vmatpush3.bf16.msra.mxu0 %v2787_v4  ;;  %1595 = vmatprep.subr.bf16.mxu1 %v2360_v45 }
  0xe1   : > { %1555 = vmatprep.subr.bf16.mxu0 %v2788_v33 }
  0xe3   : > { %1597 = vmatpush3.bf16.msra.mxu1 %v2362_v0 }
  0xe4   : > { %1557 = vmatpush3.bf16.msra.mxu0 %v2789_v36  ;;  %1631 = vmatprep.subr.bf16.mxu1 %v2035_v60  ;;  %v2794_v60 = vpack.c.bf16 %v2336_v38, %v2334_v40 }
  0xe5   : > { %1559 = vmatprep.subr.bf16.mxu0 %v2790_v10 }
  0xe6   : > { %845 = vmatmul.mubr.f32.vlgmr.msra.gmra.mrb[2].mxu1 %v364_v43 }
  0xe7   : > { %1633 = vmatpush3.bf16.msra.mxu1 %v2058_v5  ;;  %1252 = vmatprep.mubr.msk.f32.mxu1 %vm2496_vm5, %v2791_v44  ;;  %v2795_v5 = vld [vmem:[#allocation13_spill] sm:$0xff] }
  0xe8   : > { %1561 = vmatpush3.bf16.msra.mxu0 %v2792_v35  ;;  %1635 = vmatprep.subr.bf16.mxu1 %v2086_v37  ;;  %v2796_v37 = vld [vmem:[#allocation14_spill] sm:$0xff] }
  0xe9   : > { %1563 = vmatprep.subr.bf16.mxu0 %v2793_v28 }
  0xeb   : > { %1637 = vmatpush3.bf16.msra.mxu1 %v2137_v11  ;;  %v2797_v11 = vld [vmem:[#allocation15_spill] sm:$0xff] }
  0xec   : > { %1565 = vmatpush3.bf16.msra.mxu0 %v2794_v60  ;;  %1639 = vmatprep.subr.bf16.mxu1 %v2159_v52 }
  0xed   : > { %1599 = vmatprep.subr.bf16.mxu0 %v2403_v50 }
  0xef   : > { %737 = vmatmul.mubr.f32.vlgmr.msra.gmra.mrb[2].mxu0 %v363_v56  ;;  %1641 = vmatpush3.bf16.msra.mxu1 %v2185_v55  ;;  %v1254_v56 = vld [vmem:[%s2669_s2] ss:$0 sm:$0xff] }
  0xf0   : > { %1601 = vmatpush3.bf16.msra.mxu0 %v2409_v23  ;;  %1250 = vmatprep.mubr.msk.f32.mxu0 %vm2496_vm5, %v2791_v44 }
  0xf1   : > { %1643 = vmatprep.subr.bf16.mxu1 %v2211_v41  ;;  %1603 = vmatprep.subr.bf16.mxu0 %v2416_v12 }
  0xf3   : > { %1645 = vmatpush3.bf16.msra.mxu1 %v2776_v59 }
  0xf4   : > { %1605 = vmatpush3.bf16.msra.mxu0 %v2422_v6  ;;  %1647 = vmatprep.subr.bf16.mxu1 %v2778_v2 }
  0xf5   : > { %1607 = vmatprep.subr.bf16.mxu0 %v2428_v24 }
  0xf7   : > { %1649 = vmatpush3.bf16.msra.mxu1 %v2780_v19 }
  0xf8   : > { %1609 = vmatpush3.bf16.msra.mxu0 %v2434_v34  ;;  %1651 = vmatprep.subr.bf16.mxu1 %v2782_v21 }
  0xf9   : > { %1611 = vmatprep.subr.bf16.mxu0 %v2440_v3 }
  0xfb   : > { %1653 = vmatpush3.bf16.msra.mxu1 %v2784_v27 }
  0xfc   : > { %1613 = vmatpush3.bf16.msra.mxu0 %v2795_v5  ;;  %1655 = vmatprep.subr.bf16.mxu1 %v2353_v47 }
  0xfd   : > { %1615 = vmatprep.subr.bf16.mxu0 %v2796_v37 }
  0xff   : > { %1657 = vmatpush3.bf16.msra.mxu1 %v2355_v58 }
 0x100   : > { %1617 = vmatpush3.bf16.msra.mxu0 %v2797_v11  ;;  %1659 = vmatprep.subr.bf16.mxu1 %v2360_v45 }
 0x101   : > { %1619 = vmatprep.subr.bf16.mxu0 %v2798_v17 }
 0x103   : > { %1661 = vmatpush3.bf16.msra.mxu1 %v2362_v0 }
 0x104   : > { %1621 = vmatpush3.bf16.msra.mxu0 %v2799_v57 }
 0x105   : > { %1623 = vmatprep.subr.bf16.mxu0 %v2476_v46 }
 0x106   : > { %1253 = vmatmul.mubr.msk.f32.vlgmr.msra.gmra.mrb[4].mxu1 %vm2492_vm4, %v2791_v44 }
 0x108   : > { %1625 = vmatpush3.bf16.msra.mxu0 %v2482_v13 }
 0x109   : > { %1627 = vmatprep.subr.bf16.mxu0 %v2488_v29 }
 0x10c   : > { %1629 = vmatpush3.bf16.msra.mxu0 %v2490_v15 }
 0x10f   : > { %1251 = vmatmul.mubr.msk.f32.vlgmr.msra.gmra.mrb[4].mxu0 %vm2492_vm4, %v2791_v44 }
 0x199   : > { %v1327_v52 = vpop.f32.mrb[0].mxu1 }
 0x19a   : > { %v1328_v32 = vpop.f32.mrb[1].mxu1 }
 0x19b   : > { %v1329_v42 = vadd.f32 %v1328_v32, %v1327_v52 }
 0x1a2   : > { %v1292_v39 = vpop.f32.mrb[0].mxu0 }
 0x1a3   : > { %v1293_v55 = vpop.f32.mrb[1].mxu0 }
 0x1a4   : > { %v1294_v8 = vadd.f32 %v1293_v55, %v1292_v39 }
 0x1a6   : > { %v601_v1 = vadd.f32 %v1329_v42, %v1294_v8 }
 0x1b9   : > { %v1397_v41 = vpop.f32.mrb[2].mxu1 }
 0x1ba   : > { %v1398_v54 = vpop.f32.mrb[3].mxu1 }
 0x1bb   : > { %v1399_v25 = vadd.f32 %v1398_v54, %v1397_v41 }
 0x1c2   : > { %v1362_v62 = vpop.f32.mrb[2].mxu0 }
 0x1c3   : > { %v1363_v14 = vpop.f32.mrb[3].mxu0 }
 0x1c4   : > { %v1364_v49 = vadd.f32 %v1363_v14, %v1362_v62 }
 0x1c6   : > { %v739_v51 = vadd.f32 %v1364_v49, %v601_v1 }
 0x1c8   : > { %v847_v30 = vadd.f32 %v1399_v25, %v739_v51 }
 0x1d9   : > { %v1467_v0 = vpop.f32.mrb[4].mxu1 }
 0x1da   : > { %v1468_v45 = vpop.f32.mrb[5].mxu1 }
 0x1db   : > { %v1469_v40 = vadd.f32 %v1468_v45, %v1467_v0 }
 0x1e2   : > { %v1432_v38 = vpop.f32.mrb[4].mxu0 }
 0x1e3   : > { %v1433_v47 = vpop.f32.mrb[5].mxu0 }
 0x1e4   : > { %v1434_v58 = vadd.f32 %v1433_v47, %v1432_v38 }
 0x1e6   : > { %v1015_v46 = vadd.f32 %v1434_v58, %v847_v30 }
 0x1e8   : > { %v1119_v29 = vadd.f32 %v1469_v40, %v1015_v46 }
 0x1ea   : > { %1122 = vadd.xlane.f32.xlu1 %v1119_v29 }
 0x277   : > { %v1123_v13 = vpop.xlane.xlu1 %1122 }
 0x278   : > { %v1124_v3 = vmul.f32 0.03125, %v1123_v13 }
 0x27a   : > { %v1125_v34 = vsub.f32 %v1119_v29, %v1124_v3  ;;  %v1129_v23 = vmul.f32 96.0, %v1124_v3 }
 0x27c   : > { %v1126_v50 = vmul.f32 %v1125_v34, %v1125_v34  ;;  %v1130_v12 = vmul.f32 %v1129_v23, %v1124_v3 }
 0x27e   : > { %1127 = vadd.xlane.f32.xlu1 %v1126_v50 }
 0x30b   : > { %v1128_v6 = vpop.xlane.xlu1 %1127 }
 0x30c   : > { %v1131_v24 = vsub.f32 %v1128_v6, %v1130_v12 }
 0x30e   : > { %v1132_v15 = vmul.f32 0.03125, %v1131_v24 }
 0x310   : > { %v1133_v7 = vadd.f32 1e-12, %v1132_v15 }
 0x312   : > { %1720 = vrsqrt.f32 %v1133_v7 }
 0x31c   : > { %v1721_v18 = vpop.eup %1720 }
 0x31d   : > { %v1135_v59 = vmul.f32 %v1721_v18, %v1125_v34 }
 0x31f   : > { %v1143_v43 = vmul.f32 %v1254_v56, %v1135_v59 }
 0x321   : > { %v1151_v48 = vadd.f32 %v1255_v61, %v1143_v43 }
 0x323   : > { %1152 = vst [vmem:[%s203_s12] sm:$0xff] %v1151_v48 }
 0x324   : > { %1763 = shalt.err (!%p1760_p7)
}
 0x325   : > { %s1764_s29 = scalar_lea.hbm %s2625_s22, 128  ;;  %s1768_s7 = scalar_lea.hbm %s2671_s4, 256 }
 0x326   : > { %p1765_p8 = scmp.ne.s32.totalorder %s2625_s22, %s1764_s29  ;;  %p1769_p1 = scmp.lt.u32.totalorder %s2625_s22, %s2671_s4 }
 0x327   : > { %p1770_p0 = scmp.lt.u32.totalorder %s1768_s7, %s1764_s29  ;;  %p1772_p6 = scmp.lt.u32.totalorder %s1764_s29, %s2625_s22 }
 0x328   : > { %p1766_p11 = pnand %p1765_p8, %p2800_p9 }
 0x329   : > { %p1771_p5 = por %p1770_p0, %p1769_p1 }
 0x32a   : > { %p1767_p13 = pneg %p1766_p11 }
 0x32b   : > { %p1773_p10 = por %p1772_p6, %p1771_p5 }
 0x32d   : > { %p1774_p12 = pnand %p1773_p10, %p1767_p13 }
 0x32f   : > { %1777 = shalt.err (!%p1774_p12)
}
 0x330   : > { %1666 = dma.vmem_to_hbm [thread:$0]  (%p2800_p9), %s2627_s13, 128, %s2625_s22, %s1154_s23  }
 0x331 PF: > { %p1678_p2 = scmp.ge.s32.totalorder %s1816_s18, 2  ;;  %s1179_s10 = sand.u32 1, %s1804_s15  }
 0x332   : > { %p2801_p3 = scmp.ne.s32.totalorder %s2721_s26, 0  ;;  %s1180_s11 = scalar_lea.sflag [#allocation4], %s1179_s10 }
 0x334   : > { %p1673_p4 = pnand %p1678_p2, %p2801_p3 }
 0x336   : > { %1799 = dma.done.wait (!%p1673_p4), %s1180_s11, 128  }
 0x337   : > { %1801 = vsyncadd (!%p1673_p4), %s1180_s11, 4294967168  ;;  %p15_p7 = scmp.ge.s32.totalorder %s1876_s21, 4   ;;  %s2802_s15 = smov %s1808_s16 }
 0x338   : > { %s2803_s16 = smov %s1812_s17  ;;  %s2804_s17 = smov %s1887_s24 }
 0x339   : > { %s2805_s18 = smov %s1876_s21  ;;  %17 = sbr.rel (!%p15_p7) target bundleno = 4 (0x4), region = 76 }
 0x340   :  { %1185 = vsyncpa [#allocation3], 1 }
 0x341   :  { %1187 = vsyncpa [#allocation3 + $0x1], 1 }
 0x342   :  { %1188 = vsyncpa [#allocation4], 1 }
 0x343   :  { %1190 = vsyncpa [#allocation4 + $0x1], 1 }

// kernel: tpu_custom_call.1
= control target key start
LH: loop header
LB: loop body
LE: loop exit
PB: predicated region body
PF: predicated region fallthrough
CT: control target
= control target key end

     0   :  { %9 = vsyncpa [#allocation3], 0  ;;  %s859_s0 = inlined_call_operand.vmem [shape: s32[16,2], index: 0, kind: input, shape index: {}]   ;;  %s860_s1 = inlined_call_operand.hbm [shape: f32[256,128], index: 1, kind: input, shape index: {}]   ;;  %s861_s2 = inlined_call_operand.vmem [shape: f32[1,128], index: 2, kind: input, shape index: {}]   ;;  %s862_s3 = inlined_call_operand.vmem [shape: f32[1,128], index: 3, kind: input, shape index: {}]   ;;  %s863_s4 = inlined_call_operand.hbm [shape: f32[16,128], index: 4, kind: output, shape index: {}]  }
   0x1   :  { %10 = vsyncpa [#allocation4], 0 }
   0x2   :  { %12 = vsyncpa [#allocation4 + $0x1], 0  ;;  %s718_s15 = smov 0   ;;  %s720_s16 = smov 0  }
   0x3   :  { %s722_s17 = smov 0   ;;  %s724_s18 = smov 0  }
   0x4 LB: > { %s739_s19 = sadd.s32 4294967295, %s684_s18   ;;  %s446_s20 = sadd.s32 4294967294, %s684_s18   ;;  %s684_s18 = sphi %s724_s18, %s879_s18   ;;  %s680_s17 = sphi %s722_s17, %s878_s17   ;;  %s676_s16 = sphi %s720_s16, %s877_s16   ;;  %s672_s15 = sphi %s718_s15, %s876_s15  }
   0x5   : > { %s743_s21 = sadd.s32 1, %s684_s18   ;;  %s114_s22 = sadd.s32 1, %s680_s17 }
   0x6   : > { %s111_s23 = ssub.s32 %s684_s18, %s743_s21  ;;  %p124_p0 = scmp.ne.s32.totalorder %s680_s17, %s676_s16 }
   0x7   : > { %p112_p1 = scmp.eq.s32.totalorder %s111_s23, 0  ;;  %p125_p2 = scmp.eq.s32.totalorder %s739_s19, 1 }
   0x8   : > { %p130_p3 = scmp.ne.s32.totalorder %s676_s16, %s672_s15  ;;  %p131_p4 = scmp.eq.s32.totalorder %s446_s20, 1 }
   0x9   : > { %s754_s24 = scalar_select %p112_p1, %s680_s17, %s114_s22  }
   0xa   : > { %p756_p5 = por %p125_p2, %p124_p0  ;;  %p760_p6 = por %p131_p4, %p130_p3 }
   0xb   : > { %p447_p7 = scmp.ge.s32.totalorder %s684_s18, 1  ;;  %p138_p8 = scmp.lt.s32.totalorder %s684_s18, 3 }
   0xc   : > { %s867_s25 = scalar_select %p756_p5, 1, 0 }
   0xd   : > { %s868_s26 = scalar_select %p760_p6, 1, 0 }
   0xe   : > { %p864_p9 = scmp.eq.s32.totalorder %s739_s19, 0  ;;  %p767_p10 = pnand %p447_p7, %p138_p8 }
   0xf   : > { %s686_s28 = smov [#allocation2]   ;;  %s590_s7 = scalar_lea.hbm %s860_s1, 4096 }
  0x10   : > { %s869_s27 = scalar_select %p767_p10, 1, 0 }
  0x11   : > { %s150_s29 = sshll.u32 %s686_s28, 4  ;;  %p537_p11 = pneg %p767_p10  ;;  %s151_s29 = int_to_ptr.vmem [resolvable:$true] %s150_s29 }
  0x12   : > { %p591_p13 = scmp.ne.s32.totalorder %s860_s1, %s590_s7  ;;  %p597_p3 = scmp.lt.u32.totalorder %s590_s7, %s860_s1 }
  0x13   : > { %p775_p12 = pnand %p864_p9, %p537_p11 }
  0x15   : > { %p592_p0 = pneg %p775_p12 }
  0x17   : > { %p593_p1 = pnand %p592_p0, %p591_p13 }
  0x19   : > { %p594_p2 = pneg %p593_p1 }
  0x1b   : > { %p599_p4 = pnand %p597_p3, %p594_p2 }
  0x1d   : > { %602 = shalt.err (!%p599_p4)
}
  0x1e   : > { %s603_s12 = scalar_lea.vmem %s151_s29, 4096  ;;  %p611_p9 = scmp.lt.s32.totalorder %s151_s29, %s151_s29 }
  0x1f   : > { %p604_p7 = scmp.ne.s32.totalorder %s151_s29, %s603_s12  ;;  %p612_p6 = scmp.lt.s32.totalorder %s603_s12, %s603_s12 }
  0x21   : > { %p606_p8 = pnand %p604_p7, %p592_p0  ;;  %p613_p5 = por %p612_p6, %p611_p9 }
  0x23   : > { %p607_p11 = pneg %p606_p8 }
  0x25   : > { %p614_p10 = pnand %p613_p5, %p607_p11 }
  0x27   : > { %617 = shalt.err (!%p614_p10)
}
  0x28   : > { %s687_s13 = smov 128   ;;  %s688_s14 = smov 8  }
  0x29   : > { %540 = dma.hbm_to_vmem [thread:$0]  (!%p775_p12), %s860_s1, 4096, %s151_s29, [#allocation3], %s687_s13, %s687_s13, %s688_s14  }
  0x2a   : > { %p871_p13 = scmp.ne.s32.totalorder %s869_s27, 0 }
  0x2b   : > { %p872_p1 = scmp.eq.s32.totalorder (!%p871_p13), %s739_s19, 0 }
  0x2c   : > { %179 = sbr.rel (%p871_p13) target bundleno = 738 (0x2e2), region = 36 }
  0x33   : > { %663 = dma.done.wait (%p872_p1), [#allocation3], 4096   ;;  %p873_p0 = pmov %p872_p1 }
  0x34   : > { %p204_p5 = scmp.lt.s32.totalorder %s739_s19, 1  ;;  %v689_v0 = vmov 0   ;;  %v244_v2 = vld [vmem:[#allocation2 + $0x80] sm:$0xff]  ;;  %v245_v3 = vld [vmem:[#allocation2 + $0x88] sm:$0xff]  ;;  %v246_v7 = vld [vmem:[#allocation2 + $0x90] sm:$0xff]  ;;  %v690_v16 = vmov 1   ;;  %v209_v51 = vlaneseq }
  0x35   : > { %665 = vsyncadd (%p873_p0), [#allocation3], 4294963200  ;;  %586 = vset.pattern.permute.xlu0 %v689_v0  ;;  %v499_v4 = vpack.c.bf16 %v245_v3, %v244_v2  ;;  %v228_v5 = vld [vmem:[#allocation2] sm:$0xff]  ;;  %v229_v6 = vld [vmem:[#allocation2 + $0x8] sm:$0xff]  ;;  %v691_v56 = vmov 1.0   ;;  %s201_s27 = sand.u32 1, %s676_s16  }
  0x36   : > { %s205_s23 = scalar_select %p204_p5, %s739_s19, 1  ;;  %v501_v8 = vpack.c.bf16 %v229_v6, %v228_v5  ;;  %v247_v9 = vld [vmem:[#allocation2 + $0x98] sm:$0xff]  ;;  %v230_v10 = vld [vmem:[#allocation2 + $0x10] sm:$0xff]  ;;  %v248_v13 = vld [vmem:[#allocation2 + $0xa0] sm:$0xff]  ;;  %v210_v52 = vand.u32 127, %v209_v51 }
  0x37   : > { %v231_v11 = vld [vmem:[#allocation2 + $0x18] sm:$0xff]  ;;  %500 = vmatprep.subr.bf16.mxu0 %v499_v4  ;;  %v503_v12 = vpack.c.bf16 %v247_v9, %v246_v7  ;;  %v249_v14 = vld [vmem:[#allocation2 + $0xa8] sm:$0xff]  ;;  %v232_v18 = vld [vmem:[#allocation2 + $0x20] sm:$0xff]  ;;  %s452_s6 = sshll.u32 %s201_s27, 3  ;;  %s461_s11 = sshll.u32 %s739_s19, 7 }
  0x38   : > { %s453_s28 = sshll.u32 %s205_s23, 3  ;;  %502 = vmatpush3.bf16.msra.mxu0 %v501_v8  ;;  %v505_v15 = vpack.c.bf16 %v231_v11, %v230_v10  ;;  %v507_v17 = vpack.c.bf16 %v249_v14, %v248_v13  ;;  %v233_v19 = vld [vmem:[#allocation2 + $0x28] sm:$0xff]  ;;  %v250_v20 = vld [vmem:[#allocation2 + $0xb0] sm:$0xff]  ;;  %v251_v21 = vld [vmem:[#allocation2 + $0xb8] sm:$0xff]  ;;  %v211_v54 = vadd.s32 128, %v210_v52  ;;  %s203_s12 = scalar_lea.vmem [#allocation5], %s452_s6 }
  0x39   : > { %s207_s29 = scalar_lea.vmem %s859_s0, %s453_s28  ;;  %504 = vmatprep.subr.bf16.mxu0 %v503_v12  ;;  %v509_v22 = vpack.c.bf16 %v233_v19, %v232_v18  ;;  %v511_v23 = vpack.c.bf16 %v251_v21, %v250_v20  ;;  %v234_v24 = vld [vmem:[#allocation2 + $0x30] sm:$0xff]  ;;  %v235_v25 = vld [vmem:[#allocation2 + $0x38] sm:$0xff]  ;;  %v252_v26 = vld [vmem:[#allocation2 + $0xc0] sm:$0xff]  ;;  %s375_s13 = sshll.u32 %s203_s12, 4  ;;  %s819_s13 = int_to_ptr.vmem [resolvable:$true] %s375_s13 }
  0x3a   : > { %v208_v1 = vld [vmem:[%s207_s29] sm:$0xff]  ;;  %v253_v27 = vld [vmem:[#allocation2 + $0xc8] sm:$0xff]  ;;  %v513_v28 = vpack.c.bf16 %v235_v25, %v234_v24  ;;  %v236_v30 = vld [vmem:[#allocation2 + $0x40] sm:$0xff]  ;;  %s817_s22 = scalar_lea.hbm %s863_s4, %s461_s11  ;;  %s362_s23 = scalar_lea.sflag [#allocation4], %s201_s27 }
  0x3b   : > { %213 = vperm.xlu0 %586, %v208_v1   ;;  %v515_v29 = vpack.c.bf16 %v253_v27, %v252_v26  ;;  %v237_v31 = vld [vmem:[#allocation2 + $0x48] sm:$0xff]  ;;  %v254_v32 = vld [vmem:[#allocation2 + $0xd0] sm:$0xff]  ;;  %v255_v33 = vld [vmem:[#allocation2 + $0xd8] sm:$0xff]  ;;  %s618_s28 = scalar_lea.vmem %s819_s13, 128  ;;  %p874_p9 = scmp.ne.s32.totalorder %s867_s25, 0 }
  0x3c   : > { %506 = vmatpush3.bf16.msra.mxu0 %v505_v15  ;;  %v517_v34 = vpack.c.bf16 %v237_v31, %v236_v30  ;;  %v519_v35 = vpack.c.bf16 %v255_v33, %v254_v32  ;;  %v238_v36 = vld [vmem:[#allocation2 + $0x50] sm:$0xff]  ;;  %v239_v37 = vld [vmem:[#allocation2 + $0x58] sm:$0xff]  ;;  %v256_v38 = vld [vmem:[#allocation2 + $0xe0] sm:$0xff]  ;;  %p619_p6 = scmp.ne.s32.totalorder %s819_s13, %s618_s28  ;;  %s692_s19 = smov [#allocation5]  }
  0x3d   : > { %508 = vmatprep.subr.bf16.mxu0 %v507_v17  ;;  %v257_v39 = vld [vmem:[#allocation2 + $0xe8] sm:$0xff]  ;;  %v521_v40 = vpack.c.bf16 %v239_v37, %v238_v36  ;;  %v240_v42 = vld [vmem:[#allocation2 + $0x60] sm:$0xff]  ;;  %v258_v44 = vld [vmem:[#allocation2 + $0xf0] sm:$0xff]  ;;  %s622_s30 = sshll.u32 %s692_s19, 4  ;;  %s623_s30 = int_to_ptr.vmem [resolvable:$false] %s622_s30 }
  0x3e   : > { %v523_v41 = vpack.c.bf16 %v257_v39, %v256_v38  ;;  %v241_v43 = vld [vmem:[#allocation2 + $0x68] sm:$0xff]  ;;  %v259_v45 = vld [vmem:[#allocation2 + $0xf8] sm:$0xff]  ;;  %v242_v48 = vld [vmem:[#allocation2 + $0x70] sm:$0xff]  ;;  %p620_p10 = pnand %p619_p6, %p874_p9  ;;  %s624_s5 = scalar_lea.vmem %s623_s30, 256 }
  0x3f   : > { %587 = vset.pattern.permute.xlu0 %v690_v16  ;;  %v525_v46 = vpack.c.bf16 %v241_v43, %v240_v42  ;;  %v527_v47 = vpack.c.bf16 %v259_v45, %v258_v44  ;;  %v243_v49 = vld [vmem:[#allocation2 + $0x78] sm:$0xff]  ;;  %v458_v7 = vld [vmem:[%s861_s2] ss:$0 sm:$0xff]  ;;  %p625_p2 = scmp.lt.s32.totalorder %s819_s13, %s623_s30  ;;  %p626_p3 = scmp.lt.s32.totalorder %s624_s5, %s618_s28 }
  0x40   : > { %218 = vperm.xlu0 %587, %v208_v1   ;;  %510 = vmatpush3.bf16.msra.mxu0 %v509_v22  ;;  %v529_v50 = vpack.c.bf16 %v243_v49, %v242_v48  ;;  %v459_v9 = vld [vmem:[%s862_s3] ss:$0 sm:$0xff]  ;;  %p621_p12 = pneg %p620_p10 }
  0x41   : > { %512 = vmatprep.subr.bf16.mxu0 %v511_v23  ;;  %p627_p4 = por %p626_p3, %p625_p2 }
  0x43   : > { %p628_p7 = pnand %p627_p4, %p621_p12 }
  0x44   : > { %514 = vmatpush3.bf16.msra.mxu0 %v513_v28 }
  0x45   : > { %516 = vmatprep.subr.bf16.mxu0 %v515_v29 }
  0x48   : > { %518 = vmatpush3.bf16.msra.mxu0 %v517_v34 }
  0x49   : > { %520 = vmatprep.subr.bf16.mxu0 %v519_v35 }
  0x4c   : > { %522 = vmatpush3.bf16.msra.mxu0 %v521_v40 }
  0x4d   : > { %524 = vmatprep.subr.bf16.mxu0 %v523_v41 }
  0x50   : > { %526 = vmatpush3.bf16.msra.mxu0 %v525_v46 }
  0x51   : > { %528 = vmatprep.subr.bf16.mxu0 %v527_v47 }
  0x54   : > { %530 = vmatpush3.bf16.msra.mxu0 %v529_v50 }
  0xba   : > { %v214_v53 = vpop.permute.xlu0 %213 }
  0xbb   : > { %vm215_vm0 = vcmp.eq.s32.totalorder %v210_v52, %v214_v53  ;;  %vm216_vm4 = vcmp.eq.s32.totalorder %v211_v54, %v214_v53 }
  0xbf   : > { %v219_v55 = vpop.permute.xlu0 %218 }
  0xc0   : > { %vm220_vm1 = vcmp.eq.s32.totalorder %v210_v52, %v219_v55  ;;  %vm221_vm2 = vcmp.eq.s32.totalorder %v211_v54, %v219_v55 }
  0xc1   : > { %vm222_vm3 = vmor %vm215_vm0, %vm220_vm1 }
  0xc2   : > { %vm223_vm5 = vmor %vm216_vm4, %vm221_vm2 }
  0xc3   : > { %456 = vmatprep.mubr.msk.f32.mxu0 %vm223_vm5, %v691_v56 }
  0xc4   : > { %457 = vmatmul.mubr.msk.f32.vlgmr.msra.gmra.mrb[0].mxu0 %vm222_vm3, %v691_v56 }
 0x197   : > { %v496_v57 = vpop.f32.mrb[0].mxu0 }
 0x198   : > { %v497_v58 = vpop.f32.mrb[1].mxu0 }
 0x199   : > { %v498_v59 = vadd.f32 %v497_v58, %v496_v57 }
 0x19b   : > { %330 = vadd.xlane.f32.xlu1 %v498_v59 }
 0x228   : > { %v331_v60 = vpop.xlane.xlu1 %330 }
 0x229   : > { %v332_v61 = vmul.f32 0.03125, %v331_v60 }
 0x22b   : > { %v333_v62 = vsub.f32 %v498_v59, %v332_v61  ;;  %v337_v0 = vmul.f32 96.0, %v332_v61 }
 0x22d   : > { %v334_v63 = vmul.f32 %v333_v62, %v333_v62  ;;  %v338_v1 = vmul.f32 %v337_v0, %v332_v61 }
 0x22f   : > { %335 = vadd.xlane.f32.xlu1 %v334_v63 }
 0x2bc   : > { %v336_v2 = vpop.xlane.xlu1 %335 }
 0x2bd   : > { %v339_v3 = vsub.f32 %v336_v2, %v338_v1 }
 0x2bf   : > { %v340_v4 = vmul.f32 0.03125, %v339_v3 }
 0x2c1   : > { %v341_v5 = vadd.f32 1e-12, %v340_v4 }
 0x2c3   : > { %588 = vrsqrt.f32 %v341_v5 }
 0x2cd   : > { %v589_v6 = vpop.eup %588 }
 0x2ce   : > { %v343_v8 = vmul.f32 %v589_v6, %v333_v62 }
 0x2d0   : > { %v351_v10 = vmul.f32 %v458_v7, %v343_v8 }
 0x2d2   : > { %v359_v11 = vadd.f32 %v459_v9, %v351_v10 }
 0x2d4   : > { %360 = vst [vmem:[%s203_s12] sm:$0xff] %v359_v11 }
 0x2d5   : > { %631 = shalt.err (!%p628_p7)
}
 0x2d6   : > { %s632_s29 = scalar_lea.hbm %s817_s22, 128  ;;  %s636_s7 = scalar_lea.hbm %s863_s4, 256 }
 0x2d7   : > { %p633_p8 = scmp.ne.s32.totalorder %s817_s22, %s632_s29  ;;  %p637_p1 = scmp.lt.u32.totalorder %s817_s22, %s863_s4 }
 0x2d8   : > { %p638_p0 = scmp.lt.u32.totalorder %s636_s7, %s632_s29  ;;  %p640_p6 = scmp.lt.u32.totalorder %s632_s29, %s817_s22 }
 0x2d9   : > { %p634_p11 = pnand %p633_p8, %p874_p9 }
 0x2da   : > { %p639_p5 = por %p638_p0, %p637_p1 }
 0x2db   : > { %p635_p13 = pneg %p634_p11 }
 0x2dc   : > { %p641_p10 = por %p640_p6, %p639_p5 }
 0x2de   : > { %p642_p12 = pnand %p641_p10, %p635_p13 }
 0x2e0   : > { %645 = shalt.err (!%p642_p12)
}
 0x2e1   : > { %535 = dma.vmem_to_hbm [thread:$0]  (%p874_p9), %s819_s13, 128, %s817_s22, %s362_s23  }
 0x2e2 PF: > { %p547_p2 = scmp.ge.s32.totalorder %s684_s18, 2  ;;  %s387_s10 = sand.u32 1, %s672_s15  }
 0x2e3   : > { %p875_p3 = scmp.ne.s32.totalorder %s868_s26, 0  ;;  %s388_s11 = scalar_lea.sflag [#allocation4], %s387_s10 }
 0x2e5   : > { %p542_p4 = pnand %p547_p2, %p875_p3 }
 0x2e7   : > { %667 = dma.done.wait (!%p542_p4), %s388_s11, 128  }
 0x2e8   : > { %669 = vsyncadd (!%p542_p4), %s388_s11, 4294967168  ;;  %p15_p7 = scmp.ge.s32.totalorder %s743_s21, 4   ;;  %s876_s15 = smov %s676_s16 }
 0x2e9   : > { %s877_s16 = smov %s680_s17  ;;  %s878_s17 = smov %s754_s24 }
 0x2ea   : > { %s879_s18 = smov %s743_s21  ;;  %17 = sbr.rel (!%p15_p7) target bundleno = 4 (0x4), region = 76 }
 0x2f1   :  { %393 = vsyncpa [#allocation3], 1 }
 0x2f2   :  { %395 = vsyncpa [#allocation3 + $0x1], 1 }
 0x2f3   :  { %396 = vsyncpa [#allocation4], 1 }
 0x2f4   :  { %398 = vsyncpa [#allocation4 + $0x1], 1 }

</bundles_post_ra>
